<compile_context>
chip_gen: v7x
topology: tpu7x:2x2x1
jax: 0.10.0
libtpu: 0.0.40
codegen_flags: <defaults>
</compile_context>

<pallas_src>
import functools

import jax
import jax.numpy as jnp
from jax import lax
from jax.experimental import pallas as pl
from jax.experimental.pallas import tpu as pltpu


def _channel_mix(w, x, b):
    """y = w @ x + b.   w: (Co, Ci), x: (Ci, HW), b: (Co, 1) -> (Co, HW) f32.

    For tiny Ci (1x1 conv on few channels) the MXU would run at <4% of its K
    dimension, so lower to Ci rank-1 VPU broadcast-multiply-adds instead.
    Falls back to the MXU for larger channel counts.
    """
    ci = w.shape[1]
    if ci <= 8:
        acc = b + w[:, 0:1] * x[0:1, :]
        for c in range(1, ci):
            acc = acc + w[:, c:c + 1] * x[c:c + 1, :]
        return acc
    return lax.dot_general(w, x, (((1,), (0,)), ((), ())),
                           preferred_element_type=jnp.float32) + b


def _self_attention_kernel(x_ref, cw_ref, wq_ref, bq_ref, wk_ref, bk_ref,
                           wv_ref, bv_ref, gamma_ref, out_ref, *,
                           mxu_dtype, tq):
    # x_ref / cw_ref / out_ref: (1, C, HW) blocks; weights: (C, C); bias: (C, 1)
    # gamma_ref: (1,) scalar in SMEM.
    HW = x_ref.shape[2]

    x = x_ref[0].astype(jnp.float32)       # (C, HW)
    cw = cw_ref[0].astype(jnp.float32)     # (C, HW)

    # 1x1 convs == channel mixes (+ bias broadcast over spatial lanes).
    # Computed once per grid step, hoisted out of the query-chunk loop.
    q = _channel_mix(wq_ref[...].astype(jnp.float32), cw,
                     bq_ref[...].astype(jnp.float32))
    k = _channel_mix(wk_ref[...].astype(jnp.float32), x,
                     bk_ref[...].astype(jnp.float32))
    v = _channel_mix(wv_ref[...].astype(jnp.float32), x,
                     bv_ref[...].astype(jnp.float32))

    # One explicit q transpose (f32, XLU) per grid step so every big matmul
    # below is a standard or transposed-RHS MXU contraction.
    qT_mm = jnp.transpose(q).astype(mxu_dtype)   # (HW, C)
    k_mm = k.astype(mxu_dtype)                   # (C, HW)
    v_mm = v.astype(mxu_dtype)                   # (C, HW)
    ones_mm = jnp.ones((1, HW), mxu_dtype)       # row-sum helper (lane-major)

    gamma = gamma_ref[0]                         # scalar (SMEM)

    n_chunks = HW // tq                          # static; small -> full unroll
    for ci in range(n_chunks):
        sl = slice(ci * tq, (ci + 1) * tq)

        # e[i, j] = sum_c q[c, i] * k[c, j]  -> (tq, HW); standard contraction.
        e = jnp.dot(qT_mm[sl, :], k_mm, preferred_element_type=jnp.float32)

        # Numerically-stable, UNNORMALIZED softmax (f32 on VPU/EUP).
        m = jnp.max(e, axis=-1, keepdims=True)        # (tq, 1)
        p = jnp.exp(e - m)                            # (tq, HW) f32
        p_mm = p.astype(mxu_dtype)

        # out_un[c, i] = sum_j v[c, j] * p[i, j]  -> (C, tq); transposed-RHS.
        out_un = lax.dot_general(v_mm, p_mm, (((1,), (1,)), ((), ())),
                                 preferred_element_type=jnp.float32)
        # rowsum[0, i] = sum_j p[i, j]  -> (1, tq), already lane-major.
        rowsum = lax.dot_general(ones_mm, p_mm, (((1,), (1,)), ((), ())),
                                 preferred_element_type=jnp.float32)

        # Deferred normalization: C*tq multiplies + tq approx reciprocals
        # instead of tq*HW divides.
        inv = pl.reciprocal(rowsum, approx=True)      # (1, tq)
        attn = out_un * inv                           # (C, tq)

        out_ref[0, :, sl] = (gamma * attn + x[:, sl]).astype(out_ref.dtype)


def self_attention_pallas(x, conv_weights, params, *,
                          mxu_dtype=jnp.bfloat16, tq=128):
    """x: (B, C, H, W), conv_weights: (Bc, C, H, W) NCHW. Returns (B, C, H, W)."""
    wq, bq, wk, bk, wv, bv, gamma = params
    B, C, H, W = x.shape
    HW = H * W

    # Mirror the PyTorch branch: query path uses conv_weights[:B].
    assert conv_weights.shape[0] >= B, "conv_weights batch must cover x batch"
    assert conv_weights.shape[1:] == (C, H, W)

    cw = conv_weights[:B].reshape(B, C, HW)
    xf = x.reshape(B, C, HW)
    gamma1 = gamma.reshape(1).astype(jnp.float32)     # SMEM scalar
    bq2 = bq.reshape(C, 1).astype(jnp.float32)
    bk2 = bk.reshape(C, 1).astype(jnp.float32)
    bv2 = bv.reshape(C, 1).astype(jnp.float32)

    if tq > HW or HW % tq != 0:
        tq = HW                                       # single-chunk fallback

    kernel = functools.partial(_self_attention_kernel,
                               mxu_dtype=mxu_dtype, tq=tq)

    out = pl.pallas_call(
        kernel,
        out_shape=jax.ShapeDtypeStruct((B, C, HW), x.dtype),
        grid_spec=pltpu.PrefetchScalarGridSpec(
            num_scalar_prefetch=0,
            grid=(B,),
            in_specs=[
                pl.BlockSpec((1, C, HW), lambda b: (b, 0, 0)),   # x
                pl.BlockSpec((1, C, HW), lambda b: (b, 0, 0)),   # conv_weights
                pl.BlockSpec((C, C), lambda b: (0, 0)),          # wq (resident)
                pl.BlockSpec((C, 1), lambda b: (0, 0)),          # bq
                pl.BlockSpec((C, C), lambda b: (0, 0)),          # wk
                pl.BlockSpec((C, 1), lambda b: (0, 0)),          # bk
                pl.BlockSpec((C, C), lambda b: (0, 0)),          # wv
                pl.BlockSpec((C, 1), lambda b: (0, 0)),          # bv
                pl.BlockSpec(memory_space=pltpu.MemorySpace.SMEM),  # gamma
            ],
            out_specs=pl.BlockSpec((1, C, HW), lambda b: (b, 0, 0)),
        ),
        compiler_params=pltpu.CompilerParams(
            dimension_semantics=("parallel",)),
    )(xf, cw, wq, bq2, wk, bk2, wv, bv2, gamma1)

    return out.reshape(B, C, H, W)


def self_attention_ref(x, conv_weights, params, *, mxu_dtype=jnp.float32):
    """Pure-JAX reference.  With mxu_dtype=float32 it matches the PyTorch
    forward; with bfloat16 it applies the same operand rounding the kernel
    uses for its MXU matmuls (normalization is still exact division)."""
    wq, bq, wk, bk, wv, bv, gamma = params
    B, C, H, W = x.shape
    HW = H * W
    hi = lax.Precision.HIGHEST
    cast = lambda a: a.astype(mxu_dtype).astype(jnp.float32)

    cw = conv_weights[:B].reshape(B, C, HW).astype(jnp.float32)
    xf = x.reshape(B, C, HW).astype(jnp.float32)

    q = jnp.einsum('oc,bci->boi', wq, cw, precision=hi) + bq.reshape(1, C, 1)
    k = jnp.einsum('oc,bci->boi', wk, xf, precision=hi) + bk.reshape(1, C, 1)
    v = jnp.einsum('oc,bci->boi', wv, xf, precision=hi) + bv.reshape(1, C, 1)

    energy = jnp.einsum('bci,bcj->bij', cast(q), cast(k), precision=hi)
    m = jnp.max(energy, axis=-1, keepdims=True)
    p = cast(jnp.exp(energy - m))
    num = jnp.einsum('bcj,bij->bci', cast(v), p, precision=hi)   # (B, C, HW)
    den = jnp.sum(p, axis=-1)[:, None, :]                        # (B, 1, HW)
    out = gamma.reshape(()) * (num / den) + xf
    return out.reshape(B, C, H, W).astype(x.dtype)


def init_params(key, in_channels):
    """Deterministic init mirroring nn.Conv2d(in, in, 1) param shapes."""
    C = in_channels
    keys = jax.random.split(key, 6)
    wbound = jnp.sqrt(1.0 / C)  # kernel_size=1 -> fan_in = C

    def conv_params(kw, kb):
        w = jax.random.uniform(kw, (C, C), jnp.float32, -wbound, wbound)
        b = jax.random.uniform(kb, (C, 1), jnp.float32, -wbound, wbound)
        return w, b

    wq, bq = conv_params(keys[0], keys[1])
    wk, bk = conv_params(keys[2], keys[3])
    wv, bv = conv_params(keys[4], keys[5])
    # The module inits gamma = 0 (out == x); use 0.5 so the attention path is
    # actually exercised by the checks below.
    gamma = jnp.array([0.5], dtype=jnp.float32)
    return (wq, bq, wk, bk, wv, bv, gamma)


if __name__ == "__main__":
    B, C, H, W = 2, 4, 16, 16
    key = jax.random.PRNGKey(0)
    kx, kcw, kp = jax.random.split(key, 3)

    x = jax.random.normal(kx, (B, C, H, W), jnp.float32)
    conv_weights = jax.random.normal(kcw, (B, C, H, W), jnp.float32)
    params = init_params(kp, C)

    out = self_attention_pallas(x, conv_weights, params)
    out = jax.block_until_ready(out)
    assert out.shape == (B, C, H, W)

    # Check vs. a reference with the same bf16 MXU-operand rounding
    # (remaining deltas: approx reciprocal + accumulation order).
    ref_mm = self_attention_ref(x, conv_weights, params, mxu_dtype=jnp.bfloat16)
    err_mm = jnp.max(jnp.abs(out - ref_mm))
    assert jnp.allclose(out, ref_mm, atol=2e-2, rtol=2e-2), \
        f"matched-ref max abs diff {err_mm}"

    # Looser check vs. the exact f32 (PyTorch-semantics) reference; the gap is
    # purely the bf16 rounding of the MXU operands.
    ref_f32 = self_attention_ref(x, conv_weights, params)
    err_f32 = jnp.max(jnp.abs(out - ref_f32))
    assert jnp.allclose(out, ref_f32, atol=5e-2, rtol=5e-2), \
        f"f32-ref max abs diff {err_f32}"

    print("KERNEL_OK")
</pallas_src>

<mosaic_0001>
module attributes {stable_mosaic.version = 11 : i64} {
  func.func @_self_attention_kernel(%arg0: i32, %arg1: memref<1x4x256xf32, #tpu.memory_space<vmem>>, %arg2: memref<1x4x256xf32, #tpu.memory_space<vmem>>, %arg3: memref<4x4xf32, #tpu.memory_space<vmem>>, %arg4: memref<4x1xf32, #tpu.memory_space<vmem>>, %arg5: memref<4x4xf32, #tpu.memory_space<vmem>>, %arg6: memref<4x1xf32, #tpu.memory_space<vmem>>, %arg7: memref<4x4xf32, #tpu.memory_space<vmem>>, %arg8: memref<4x1xf32, #tpu.memory_space<vmem>>, %arg9: memref<1xf32, #tpu.memory_space<smem>>, %arg10: memref<1x4x256xf32, #tpu.memory_space<vmem>>) attributes {dimension_semantics = [#tpu.dimension_semantics<parallel>], iteration_bounds = array<i64: 2>, scalar_prefetch = 0 : i64, scratch_operands = 0 : i64, tpu.core_type = #tpu.core_type<tc>, window_params = [{transform_indices = @transform_0, window_bounds = array<i64: 1, 4, 256>}, {transform_indices = @transform_1, window_bounds = array<i64: 1, 4, 256>}, {pipeline_mode = #tpu.pipeline_mode<synchronous>, transform_indices = @transform_2, window_bounds = array<i64: 4, 4>}, {pipeline_mode = #tpu.pipeline_mode<synchronous>, transform_indices = @transform_3, window_bounds = array<i64: 4, 1>}, {pipeline_mode = #tpu.pipeline_mode<synchronous>, transform_indices = @transform_4, window_bounds = array<i64: 4, 4>}, {pipeline_mode = #tpu.pipeline_mode<synchronous>, transform_indices = @transform_5, window_bounds = array<i64: 4, 1>}, {pipeline_mode = #tpu.pipeline_mode<synchronous>, transform_indices = @transform_6, window_bounds = array<i64: 4, 4>}, {pipeline_mode = #tpu.pipeline_mode<synchronous>, transform_indices = @transform_7, window_bounds = array<i64: 4, 1>}, {transform_indices = @transform_8, window_bounds = array<i64: 1>}, {transform_indices = @transform_9, window_bounds = array<i64: 1, 4, 256>}]} {
    %c0 = arith.constant 0 : index
    %c0_0 = arith.constant 0 : index
    %c0_1 = arith.constant 0 : index
    %0 = vector.load %arg1[%c0, %c0_0, %c0_1] : memref<1x4x256xf32, #tpu.memory_space<vmem>>, vector<1x4x256xf32>
    %1 = vector.shape_cast %0 : vector<1x4x256xf32> to vector<4x256xf32>
    %c0_2 = arith.constant 0 : index
    %c0_3 = arith.constant 0 : index
    %c0_4 = arith.constant 0 : index
    %2 = vector.load %arg2[%c0_2, %c0_3, %c0_4] : memref<1x4x256xf32, #tpu.memory_space<vmem>>, vector<1x4x256xf32>
    %3 = vector.shape_cast %2 : vector<1x4x256xf32> to vector<4x256xf32>
    %c0_5 = arith.constant 0 : index
    %c0_6 = arith.constant 0 : index
    %4 = vector.load %arg3[%c0_5, %c0_6] : memref<4x4xf32, #tpu.memory_space<vmem>>, vector<4x4xf32>
    %c0_7 = arith.constant 0 : index
    %c0_8 = arith.constant 0 : index
    %5 = vector.load %arg4[%c0_7, %c0_8] : memref<4x1xf32, #tpu.memory_space<vmem>>, vector<4x1xf32>
    %6 = vector.extract_strided_slice %4 {offsets = [0, 0], sizes = [4, 1], strides = [1, 1]} : vector<4x4xf32> to vector<4x1xf32>
    %7 = vector.extract_strided_slice %3 {offsets = [0, 0], sizes = [1, 256], strides = [1, 1]} : vector<4x256xf32> to vector<1x256xf32>
    %8 = vector.broadcast %6 : vector<4x1xf32> to vector<4x256xf32>
    %9 = vector.broadcast %7 : vector<1x256xf32> to vector<4x256xf32>
    %10 = arith.mulf %8, %9 : vector<4x256xf32>
    %11 = vector.broadcast %5 : vector<4x1xf32> to vector<4x256xf32>
    %12 = arith.addf %11, %10 : vector<4x256xf32>
    %13 = vector.extract_strided_slice %4 {offsets = [0, 1], sizes = [4, 1], strides = [1, 1]} : vector<4x4xf32> to vector<4x1xf32>
    %14 = vector.extract_strided_slice %3 {offsets = [1, 0], sizes = [1, 256], strides = [1, 1]} : vector<4x256xf32> to vector<1x256xf32>
    %15 = vector.broadcast %13 : vector<4x1xf32> to vector<4x256xf32>
    %16 = vector.broadcast %14 : vector<1x256xf32> to vector<4x256xf32>
    %17 = arith.mulf %15, %16 : vector<4x256xf32>
    %18 = arith.addf %12, %17 : vector<4x256xf32>
    %19 = vector.extract_strided_slice %4 {offsets = [0, 2], sizes = [4, 1], strides = [1, 1]} : vector<4x4xf32> to vector<4x1xf32>
    %20 = vector.extract_strided_slice %3 {offsets = [2, 0], sizes = [1, 256], strides = [1, 1]} : vector<4x256xf32> to vector<1x256xf32>
    %21 = vector.broadcast %19 : vector<4x1xf32> to vector<4x256xf32>
    %22 = vector.broadcast %20 : vector<1x256xf32> to vector<4x256xf32>
    %23 = arith.mulf %21, %22 : vector<4x256xf32>
    %24 = arith.addf %18, %23 : vector<4x256xf32>
    %25 = vector.extract_strided_slice %4 {offsets = [0, 3], sizes = [4, 1], strides = [1, 1]} : vector<4x4xf32> to vector<4x1xf32>
    %26 = vector.extract_strided_slice %3 {offsets = [3, 0], sizes = [1, 256], strides = [1, 1]} : vector<4x256xf32> to vector<1x256xf32>
    %27 = vector.broadcast %25 : vector<4x1xf32> to vector<4x256xf32>
    %28 = vector.broadcast %26 : vector<1x256xf32> to vector<4x256xf32>
    %29 = arith.mulf %27, %28 : vector<4x256xf32>
    %30 = arith.addf %24, %29 : vector<4x256xf32>
    %c0_9 = arith.constant 0 : index
    %c0_10 = arith.constant 0 : index
    %31 = vector.load %arg5[%c0_9, %c0_10] : memref<4x4xf32, #tpu.memory_space<vmem>>, vector<4x4xf32>
    %c0_11 = arith.constant 0 : index
    %c0_12 = arith.constant 0 : index
    %32 = vector.load %arg6[%c0_11, %c0_12] : memref<4x1xf32, #tpu.memory_space<vmem>>, vector<4x1xf32>
    %33 = vector.extract_strided_slice %31 {offsets = [0, 0], sizes = [4, 1], strides = [1, 1]} : vector<4x4xf32> to vector<4x1xf32>
    %34 = vector.extract_strided_slice %1 {offsets = [0, 0], sizes = [1, 256], strides = [1, 1]} : vector<4x256xf32> to vector<1x256xf32>
    %35 = vector.broadcast %33 : vector<4x1xf32> to vector<4x256xf32>
    %36 = vector.broadcast %34 : vector<1x256xf32> to vector<4x256xf32>
    %37 = arith.mulf %35, %36 : vector<4x256xf32>
    %38 = vector.broadcast %32 : vector<4x1xf32> to vector<4x256xf32>
    %39 = arith.addf %38, %37 : vector<4x256xf32>
    %40 = vector.extract_strided_slice %31 {offsets = [0, 1], sizes = [4, 1], strides = [1, 1]} : vector<4x4xf32> to vector<4x1xf32>
    %41 = vector.extract_strided_slice %1 {offsets = [1, 0], sizes = [1, 256], strides = [1, 1]} : vector<4x256xf32> to vector<1x256xf32>
    %42 = vector.broadcast %40 : vector<4x1xf32> to vector<4x256xf32>
    %43 = vector.broadcast %41 : vector<1x256xf32> to vector<4x256xf32>
    %44 = arith.mulf %42, %43 : vector<4x256xf32>
    %45 = arith.addf %39, %44 : vector<4x256xf32>
    %46 = vector.extract_strided_slice %31 {offsets = [0, 2], sizes = [4, 1], strides = [1, 1]} : vector<4x4xf32> to vector<4x1xf32>
    %47 = vector.extract_strided_slice %1 {offsets = [2, 0], sizes = [1, 256], strides = [1, 1]} : vector<4x256xf32> to vector<1x256xf32>
    %48 = vector.broadcast %46 : vector<4x1xf32> to vector<4x256xf32>
    %49 = vector.broadcast %47 : vector<1x256xf32> to vector<4x256xf32>
    %50 = arith.mulf %48, %49 : vector<4x256xf32>
    %51 = arith.addf %45, %50 : vector<4x256xf32>
    %52 = vector.extract_strided_slice %31 {offsets = [0, 3], sizes = [4, 1], strides = [1, 1]} : vector<4x4xf32> to vector<4x1xf32>
    %53 = vector.extract_strided_slice %1 {offsets = [3, 0], sizes = [1, 256], strides = [1, 1]} : vector<4x256xf32> to vector<1x256xf32>
    %54 = vector.broadcast %52 : vector<4x1xf32> to vector<4x256xf32>
    %55 = vector.broadcast %53 : vector<1x256xf32> to vector<4x256xf32>
    %56 = arith.mulf %54, %55 : vector<4x256xf32>
    %57 = arith.addf %51, %56 : vector<4x256xf32>
    %c0_13 = arith.constant 0 : index
    %c0_14 = arith.constant 0 : index
    %58 = vector.load %arg7[%c0_13, %c0_14] : memref<4x4xf32, #tpu.memory_space<vmem>>, vector<4x4xf32>
    %c0_15 = arith.constant 0 : index
    %c0_16 = arith.constant 0 : index
    %59 = vector.load %arg8[%c0_15, %c0_16] : memref<4x1xf32, #tpu.memory_space<vmem>>, vector<4x1xf32>
    %60 = vector.extract_strided_slice %58 {offsets = [0, 0], sizes = [4, 1], strides = [1, 1]} : vector<4x4xf32> to vector<4x1xf32>
    %61 = vector.extract_strided_slice %1 {offsets = [0, 0], sizes = [1, 256], strides = [1, 1]} : vector<4x256xf32> to vector<1x256xf32>
    %62 = vector.broadcast %60 : vector<4x1xf32> to vector<4x256xf32>
    %63 = vector.broadcast %61 : vector<1x256xf32> to vector<4x256xf32>
    %64 = arith.mulf %62, %63 : vector<4x256xf32>
    %65 = vector.broadcast %59 : vector<4x1xf32> to vector<4x256xf32>
    %66 = arith.addf %65, %64 : vector<4x256xf32>
    %67 = vector.extract_strided_slice %58 {offsets = [0, 1], sizes = [4, 1], strides = [1, 1]} : vector<4x4xf32> to vector<4x1xf32>
    %68 = vector.extract_strided_slice %1 {offsets = [1, 0], sizes = [1, 256], strides = [1, 1]} : vector<4x256xf32> to vector<1x256xf32>
    %69 = vector.broadcast %67 : vector<4x1xf32> to vector<4x256xf32>
    %70 = vector.broadcast %68 : vector<1x256xf32> to vector<4x256xf32>
    %71 = arith.mulf %69, %70 : vector<4x256xf32>
    %72 = arith.addf %66, %71 : vector<4x256xf32>
    %73 = vector.extract_strided_slice %58 {offsets = [0, 2], sizes = [4, 1], strides = [1, 1]} : vector<4x4xf32> to vector<4x1xf32>
    %74 = vector.extract_strided_slice %1 {offsets = [2, 0], sizes = [1, 256], strides = [1, 1]} : vector<4x256xf32> to vector<1x256xf32>
    %75 = vector.broadcast %73 : vector<4x1xf32> to vector<4x256xf32>
    %76 = vector.broadcast %74 : vector<1x256xf32> to vector<4x256xf32>
    %77 = arith.mulf %75, %76 : vector<4x256xf32>
    %78 = arith.addf %72, %77 : vector<4x256xf32>
    %79 = vector.extract_strided_slice %58 {offsets = [0, 3], sizes = [4, 1], strides = [1, 1]} : vector<4x4xf32> to vector<4x1xf32>
    %80 = vector.extract_strided_slice %1 {offsets = [3, 0], sizes = [1, 256], strides = [1, 1]} : vector<4x256xf32> to vector<1x256xf32>
    %81 = vector.broadcast %79 : vector<4x1xf32> to vector<4x256xf32>
    %82 = vector.broadcast %80 : vector<1x256xf32> to vector<4x256xf32>
    %83 = arith.mulf %81, %82 : vector<4x256xf32>
    %84 = arith.addf %78, %83 : vector<4x256xf32>
    %85 = tpu.transpose %30, [1, 0] : vector<4x256xf32> -> vector<256x4xf32>
    %86 = arith.truncf %85 : vector<256x4xf32> to vector<256x4xbf16>
    %87 = arith.truncf %57 : vector<4x256xf32> to vector<4x256xbf16>
    %88 = arith.truncf %84 : vector<4x256xf32> to vector<4x256xbf16>
    %cst = arith.constant 1.000000e+00 : bf16
    %89 = vector.broadcast %cst : bf16 to vector<1x256xbf16>
    %c0_17 = arith.constant 0 : index
    %90 = memref.load %arg9[%c0_17] : memref<1xf32, #tpu.memory_space<smem>>
    %91 = vector.extract_strided_slice %86 {offsets = [0, 0], sizes = [128, 4], strides = [1, 1]} : vector<256x4xbf16> to vector<128x4xbf16>
    %cst_18 = arith.constant dense<0.000000e+00> : vector<128x256xf32>
    %92 = tpu.matmul %91, %87, %cst_18 {dimension_numbers = #tpu.dot_dimension_numbers<[1], [0], [0], [1], [0, 0, 1, 1], [], []>} : vector<128x4xbf16>, vector<4x256xbf16>, vector<128x256xf32> -> vector<128x256xf32>
    %cst_19 = arith.constant dense<0xFF800000> : vector<128xf32>
    %93 = vector.multi_reduction <maximumf>, %92, %cst_19 [1] : vector<128x256xf32> to vector<128xf32>
    %94 = vector.shape_cast %93 : vector<128xf32> to vector<128x1xf32>
    %95 = vector.broadcast %94 : vector<128x1xf32> to vector<128x256xf32>
    %96 = arith.subf %92, %95 : vector<128x256xf32>
    %97 = math.exp %96 : vector<128x256xf32>
    %98 = arith.truncf %97 : vector<128x256xf32> to vector<128x256xbf16>
    %cst_20 = arith.constant dense<0.000000e+00> : vector<4x128xf32>
    %99 = tpu.matmul %88, %98, %cst_20 {dimension_numbers = #tpu.dot_dimension_numbers<[1], [1], [0], [0], [0, 0, 1, 0], [], []>} : vector<4x256xbf16>, vector<128x256xbf16>, vector<4x128xf32> -> vector<4x128xf32>
    %cst_21 = arith.constant dense<0.000000e+00> : vector<1x128xf32>
    %100 = tpu.matmul %89, %98, %cst_21 {dimension_numbers = #tpu.dot_dimension_numbers<[1], [1], [0], [0], [0, 0, 1, 0], [], []>} : vector<1x256xbf16>, vector<128x256xbf16>, vector<1x128xf32> -> vector<1x128xf32>
    %101 = tpu.reciprocal %100 {approx = true} : vector<1x128xf32> -> vector<1x128xf32>
    %102 = vector.broadcast %101 : vector<1x128xf32> to vector<4x128xf32>
    %103 = arith.mulf %99, %102 : vector<4x128xf32>
    %104 = vector.broadcast %90 : f32 to vector<4x128xf32>
    %105 = arith.mulf %104, %103 : vector<4x128xf32>
    %106 = vector.extract_strided_slice %1 {offsets = [0, 0], sizes = [4, 128], strides = [1, 1]} : vector<4x256xf32> to vector<4x128xf32>
    %107 = arith.addf %105, %106 : vector<4x128xf32>
    %c0_22 = arith.constant 0 : index
    %c0_23 = arith.constant 0 : index
    %c0_24 = arith.constant 0 : index
    %108 = vector.load %arg10[%c0_22, %c0_23, %c0_24] : memref<1x4x256xf32, #tpu.memory_space<vmem>>, vector<1x4x128xf32>
    %109 = vector.shape_cast %108 : vector<1x4x128xf32> to vector<4x128xf32>
    %110 = vector.shape_cast %107 : vector<4x128xf32> to vector<1x4x128xf32>
    tpu.vector_store %arg10[%c0_22, %c0_23, %c0_24], %110 {strides = array<i32>} : memref<1x4x256xf32, #tpu.memory_space<vmem>>, vector<1x4x128xf32>,
    %111 = vector.extract_strided_slice %86 {offsets = [128, 0], sizes = [128, 4], strides = [1, 1]} : vector<256x4xbf16> to vector<128x4xbf16>
    %cst_25 = arith.constant dense<0.000000e+00> : vector<128x256xf32>
    %112 = tpu.matmul %111, %87, %cst_25 {dimension_numbers = #tpu.dot_dimension_numbers<[1], [0], [0], [1], [0, 0, 1, 1], [], []>} : vector<128x4xbf16>, vector<4x256xbf16>, vector<128x256xf32> -> vector<128x256xf32>
    %cst_26 = arith.constant dense<0xFF800000> : vector<128xf32>
    %113 = vector.multi_reduction <maximumf>, %112, %cst_26 [1] : vector<128x256xf32> to vector<128xf32>
    %114 = vector.shape_cast %113 : vector<128xf32> to vector<128x1xf32>
    %115 = vector.broadcast %114 : vector<128x1xf32> to vector<128x256xf32>
    %116 = arith.subf %112, %115 : vector<128x256xf32>
    %117 = math.exp %116 : vector<128x256xf32>
    %118 = arith.truncf %117 : vector<128x256xf32> to vector<128x256xbf16>
    %cst_27 = arith.constant dense<0.000000e+00> : vector<4x128xf32>
    %119 = tpu.matmul %88, %118, %cst_27 {dimension_numbers = #tpu.dot_dimension_numbers<[1], [1], [0], [0], [0, 0, 1, 0], [], []>} : vector<4x256xbf16>, vector<128x256xbf16>, vector<4x128xf32> -> vector<4x128xf32>
    %cst_28 = arith.constant dense<0.000000e+00> : vector<1x128xf32>
    %120 = tpu.matmul %89, %118, %cst_28 {dimension_numbers = #tpu.dot_dimension_numbers<[1], [1], [0], [0], [0, 0, 1, 0], [], []>} : vector<1x256xbf16>, vector<128x256xbf16>, vector<1x128xf32> -> vector<1x128xf32>
    %121 = tpu.reciprocal %120 {approx = true} : vector<1x128xf32> -> vector<1x128xf32>
    %122 = vector.broadcast %121 : vector<1x128xf32> to vector<4x128xf32>
    %123 = arith.mulf %119, %122 : vector<4x128xf32>
    %124 = vector.broadcast %90 : f32 to vector<4x128xf32>
    %125 = arith.mulf %124, %123 : vector<4x128xf32>
    %126 = vector.extract_strided_slice %1 {offsets = [0, 128], sizes = [4, 128], strides = [1, 1]} : vector<4x256xf32> to vector<4x128xf32>
    %127 = arith.addf %125, %126 : vector<4x128xf32>
    %c0_29 = arith.constant 0 : index
    %c0_30 = arith.constant 0 : index
    %c128 = arith.constant 128 : index
    %128 = vector.load %arg10[%c0_29, %c0_30, %c128] : memref<1x4x256xf32, #tpu.memory_space<vmem>>, vector<1x4x128xf32>
    %129 = vector.shape_cast %128 : vector<1x4x128xf32> to vector<4x128xf32>
    %130 = vector.shape_cast %127 : vector<4x128xf32> to vector<1x4x128xf32>
    tpu.vector_store %arg10[%c0_29, %c0_30, %c128], %130 {strides = array<i32>} : memref<1x4x256xf32, #tpu.memory_space<vmem>>, vector<1x4x128xf32>,
    return
  }
  func.func @transform_0(%arg0: i32) -> (i32, i32, i32) {
    %c0_i32 = arith.constant 0 : i32
    %c0_i32_0 = arith.constant 0 : i32
    %c0_i32_1 = arith.constant 0 : i32
    return %arg0, %c0_i32, %c0_i32_0 : i32, i32, i32
  }
  func.func @transform_1(%arg0: i32) -> (i32, i32, i32) {
    %c0_i32 = arith.constant 0 : i32
    %c0_i32_0 = arith.constant 0 : i32
    %c0_i32_1 = arith.constant 0 : i32
    return %arg0, %c0_i32, %c0_i32_0 : i32, i32, i32
  }
  func.func @transform_2(%arg0: i32) -> (i32, i32) {
    %c0_i32 = arith.constant 0 : i32
    %c0_i32_0 = arith.constant 0 : i32
    %c0_i32_1 = arith.constant 0 : i32
    return %c0_i32, %c0_i32_0 : i32, i32
  }
  func.func @transform_3(%arg0: i32) -> (i32, i32) {
    %c0_i32 = arith.constant 0 : i32
    %c0_i32_0 = arith.constant 0 : i32
    %c0_i32_1 = arith.constant 0 : i32
    return %c0_i32, %c0_i32_0 : i32, i32
  }
  func.func @transform_4(%arg0: i32) -> (i32, i32) {
    %c0_i32 = arith.constant 0 : i32
    %c0_i32_0 = arith.constant 0 : i32
    %c0_i32_1 = arith.constant 0 : i32
    return %c0_i32, %c0_i32_0 : i32, i32
  }
  func.func @transform_5(%arg0: i32) -> (i32, i32) {
    %c0_i32 = arith.constant 0 : i32
    %c0_i32_0 = arith.constant 0 : i32
    %c0_i32_1 = arith.constant 0 : i32
    return %c0_i32, %c0_i32_0 : i32, i32
  }
  func.func @transform_6(%arg0: i32) -> (i32, i32) {
    %c0_i32 = arith.constant 0 : i32
    %c0_i32_0 = arith.constant 0 : i32
    %c0_i32_1 = arith.constant 0 : i32
    return %c0_i32, %c0_i32_0 : i32, i32
  }
  func.func @transform_7(%arg0: i32) -> (i32, i32) {
    %c0_i32 = arith.constant 0 : i32
    %c0_i32_0 = arith.constant 0 : i32
    %c0_i32_1 = arith.constant 0 : i32
    return %c0_i32, %c0_i32_0 : i32, i32
  }
  func.func @transform_8(%arg0: i32) -> i32 {
    %c0_i32 = arith.constant 0 : i32
    %c0_i32_0 = arith.constant 0 : i32
    return %c0_i32 : i32
  }
  func.func @transform_9(%arg0: i32) -> (i32, i32, i32) {
    %c0_i32 = arith.constant 0 : i32
    %c0_i32_0 = arith.constant 0 : i32
    %c0_i32_1 = arith.constant 0 : i32
    return %arg0, %c0_i32, %c0_i32_0 : i32, i32, i32
  }
}

</mosaic_0001>

<bundles_post_ra>
// kernel: tpu_custom_call.1
= control target key start
LH: loop header
LB: loop body
LE: loop exit
PB: predicated region body
PF: predicated region fallthrough
CT: control target
= control target key end

     0   :  { %s2639_s0 = inlined_call_operand.vmem [shape: f32[2,4,256], index: 0, kind: input, shape index: {}]   ;;  %s2640_s1 = inlined_call_operand.hbm [shape: f32[2,4,256], index: 1, kind: input, shape index: {}]   ;;  %s2641_s2 = inlined_call_operand.vmem [shape: f32[4,4], index: 2, kind: input, shape index: {}]   ;;  %s2642_s3 = inlined_call_operand.vmem [shape: f32[4,1], index: 3, kind: input, shape index: {}]   ;;  %s2643_s4 = inlined_call_operand.vmem [shape: f32[4,4], index: 4, kind: input, shape index: {}]   ;;  %s2644_s5 = inlined_call_operand.vmem [shape: f32[4,1], index: 5, kind: input, shape index: {}]   ;;  %s2645_s6 = inlined_call_operand.vmem [shape: f32[4,4], index: 6, kind: input, shape index: {}]   ;;  %s2646_s7 = inlined_call_operand.vmem [shape: f32[4,1], index: 7, kind: input, shape index: {}]   ;;  %s2647_s8 = inlined_call_operand.<no memory space> [shape: f32[1], index: 8, kind: input, shape index: {}]   ;;  %s2648_s9 = inlined_call_operand.hbm [shape: f32[2,4,256], index: 9, kind: output, shape index: {}]  }
   0x1   :  { %14 = sst [smem:[#allocation2]] %s2647_s8 }
   0x2   :  { %15 = vsyncpa [#allocation4], 0 }
   0x3   :  { %17 = vsyncpa [#allocation4 + $0x1], 0 }
   0x4   :  { %18 = vsyncpa [#allocation5], 0 }
   0x5   :  { %20 = vsyncpa [#allocation5 + $0x1], 0  ;;  %s1999_s11 = smov 0   ;;  %s2001_s12 = smov 0  }
   0x6   :  { %s2003_s13 = smov 0   ;;  %s2005_s14 = smov 0  }
   0x7 LB: > { %s2020_s8 = sadd.s32 4294967295, %s1937_s14   ;;  %s1605_s15 = sadd.s32 4294967294, %s1937_s14   ;;  %s1937_s14 = sphi %s2005_s14, %s2663_s14   ;;  %s1933_s13 = sphi %s2003_s13, %s2662_s13   ;;  %s1929_s12 = sphi %s2001_s12, %s2661_s12   ;;  %s1925_s11 = sphi %s1999_s11, %s2660_s11  }
   0x8   : > { %s2024_s16 = sadd.s32 1, %s1937_s14   ;;  %s59_s17 = sadd.s32 1, %s1933_s13 }
   0x9   : > { %s56_s18 = ssub.s32 %s1937_s14, %s2024_s16  ;;  %p66_p0 = scmp.ne.s32.totalorder %s1933_s13, %s1929_s12 }
   0xa   : > { %p57_p1 = scmp.eq.s32.totalorder %s56_s18, 0  ;;  %p67_p2 = scmp.eq.s32.totalorder %s1937_s14, 0 }
   0xb   : > { %p72_p3 = scmp.ne.s32.totalorder %s1929_s12, %s1925_s11  ;;  %p73_p4 = scmp.eq.s32.totalorder %s2020_s8, 0 }
   0xc   : > { %s2036_s19 = scalar_select %p57_p1, %s1933_s13, %s59_s17  }
   0xd   : > { %p2038_p5 = por %p67_p2, %p66_p0  ;;  %p2042_p6 = por %p73_p4, %p72_p3 }
   0xe   : > { %p243_p7 = scmp.eq.s32.totalorder %s2020_s8, 1  ;;  %p249_p8 = scmp.eq.s32.totalorder %s1605_s15, 1 }
   0xf   : > { %p1654_p10 = scmp.lt.s32.totalorder %s1937_s14, 2  ;;  %s298_s24 = sand.u32 1, %s1933_s13  }
  0x10   : > { %p2049_p11 = por %p243_p7, %p66_p0  ;;  %p2053_p12 = por %p249_p8, %p72_p3 }
  0x11   : > { %s1639_s25 = sshll.u32 %s1937_s14, 7  ;;  %s1608_s26 = sshll.u32 %s298_s24, 3 }
  0x12   : > { %s2652_s22 = scalar_select %p2049_p11, 1, 0 }
  0x13   : > { %s2653_s23 = scalar_select %p2053_p12, 1, 0 }
  0x14   : > { %s2062_s29 = scalar_lea.hbm %s2640_s1, %s1639_s25  ;;  %s302_s30 = scalar_lea.vmem [#allocation3], %s1608_s26 }
  0x15   : > { %s310_s10 = sshll.u32 %s302_s30, 4  ;;  %p2066_p13 = pnand %p1654_p10, %p2038_p5  ;;  %s2070_s10 = int_to_ptr.vmem [resolvable:$true] %s310_s10 }
  0x16   : > { %s299_s17 = scalar_lea.sflag [#allocation4], %s298_s24  ;;  %s1841_s18 = scalar_lea.hbm %s2062_s29, 128 }
  0x17   : > { %p1842_p2 = scmp.ne.s32.totalorder %s2062_s29, %s1841_s18  ;;  %p1843_p3 = pneg %p2066_p13 }
  0x18   : > { %s1846_s26 = scalar_lea.hbm %s2640_s1, 256  ;;  %p1847_p5 = scmp.lt.u32.totalorder %s2062_s29, %s2640_s1 }
  0x19   : > { %p1844_p4 = pnand %p1843_p3, %p1842_p2  ;;  %p1848_p8 = scmp.lt.u32.totalorder %s1846_s26, %s1841_s18 }
  0x1a   : > { %p1850_p9 = scmp.lt.u32.totalorder %s1841_s18, %s2062_s29 }
  0x1b   : > { %p1845_p7 = pneg %p1844_p4  ;;  %p1849_p10 = por %p1848_p8, %p1847_p5 }
  0x1d   : > { %p1851_p0 = por %p1850_p9, %p1849_p10 }
  0x1f   : > { %p1852_p1 = pnand %p1851_p0, %p1845_p7 }
  0x21   : > { %1855 = shalt.err (!%p1852_p1)
}
  0x22   : > { %s1856_s24 = scalar_lea.vmem %s2070_s10, 128  ;;  %s1939_s30 = smov [#allocation3]  }
  0x23   : > { %p1857_p2 = scmp.ne.s32.totalorder %s2070_s10, %s1856_s24  ;;  %s1861_s20 = sshll.u32 %s1939_s30, 4  ;;  %s1862_s20 = int_to_ptr.vmem [resolvable:$false] %s1861_s20 }
  0x24   : > { %s1863_s25 = scalar_lea.vmem %s1862_s20, 256  ;;  %p1864_p11 = scmp.lt.s32.totalorder %s2070_s10, %s1862_s20 }
  0x25   : > { %p1859_p4 = pnand %p1857_p2, %p1843_p3  ;;  %p1865_p5 = scmp.lt.s32.totalorder %s1863_s25, %s1856_s24 }
  0x27   : > { %p1860_p12 = pneg %p1859_p4  ;;  %p1866_p8 = por %p1865_p5, %p1864_p11 }
  0x29   : > { %p1867_p9 = pnand %p1866_p8, %p1860_p12 }
  0x2b   : > { %1870 = shalt.err (!%p1867_p9)
}
  0x2c   : > { %1649 = dma.hbm_to_vmem [thread:$0]  (!%p2066_p13), %s2062_s29, 128, %s2070_s10, %s299_s17  }
  0x2d   : > { %p2655_p0 = scmp.lt.s32.totalorder %s1937_s14, 3  ;;  %p2656_p1 = scmp.ge.s32.totalorder %s1937_s14, 1 }
  0x2f   : > { %p316_p3 = pnand %p2656_p1, %p2655_p0 }
  0x30   : > { %s2104_s18 = sand.u32 (!%p316_p3), 1, %s1929_s12  }
  0x31   : > { %319 = sbr.rel (%p316_p3) target bundleno = 1550 (0x60e), region = 56  ;;  %s1612_s26 = sshll.u32 (!%p316_p3), %s2104_s18, 3 }
  0x32   : > { %s322_s27 = scalar_lea.sflag (!%p316_p3), [#allocation4], %s2104_s18  ;;  %s325_s15 = scalar_lea.vmem (!%p316_p3), [#allocation3], %s1612_s26 }
  0x38   : > { %1916 = dma.done.wait (%p2042_p6), %s322_s27, 128  }
  0x39   : > { %1918 = vsyncadd (%p2042_p6), %s322_s27, 4294967168  ;;  %v1940_v0 = vmov 0   ;;  %v1941_v1 = vmov 1   ;;  %v382_v2 = vlaneseq  ;;  %v374_v6 = vld [vmem:[%s2641_s2] sm:$0xf]  ;;  %v1942_v16 = vmov 2  }
  0x3a   : > { %1694 = vset.pattern.permute.xlu0 %v1940_v0  ;;  %1695 = vset.pattern.permute.xlu1 %v1941_v1  ;;  %v373_v7 = vld [vmem:[%s325_s15] sm:$0xff]  ;;  %v1943_v22 = vmov 3   ;;  %p365_p6 = scmp.lt.s32.totalorder %s2020_s8, 1  ;;  %vm750_vm0 = vcmask 1041408   ;;  %vm725_vm1 = vcmask 31744   ;;  %s2443_s30 = sld [smem:[#allocation2]] }
  0x3b   : > { %789 = vmatprep.mubr.bf16.mxu0 %v1940_v0  ;;  %v2117_v3 = vshrl.u32 %v382_v2, 7  ;;  %378 = vperm.xlu0 %1694, %v374_v6   ;;  %v375_v9 = vld [vmem:[%s2642_s3] sm:$0xf]  ;;  %s2452_s20 = scalar_lea.vmem [#allocation6], %s1612_s26  ;;  %s1641_s26 = sshll.u32 %s2020_s8, 7 }
  0x3c   : > { %410 = vperm.xlu1 %1695, %v374_v6   ;;  %v487_v21 = vld [vmem:[%s2643_s4] sm:$0xf]  ;;  %s366_s25 = scalar_select %p365_p6, %s2020_s8, 1 }
  0x3d   : > { %v388_v4 = vsub.s32 4, %v2117_v3  ;;  %v419_v5 = vsub.s32 5, %v2117_v3  ;;  %v445_v8 = vsub.s32 6, %v2117_v3  ;;  %v2129_v11 = vsub.s32 1, %v2117_v3  ;;  %v488_v24 = vld [vmem:[%s2644_s5] sm:$0xf]  ;;  %s2594_s29 = scalar_lea.hbm %s2648_s9, %s1641_s26 }
  0x3e   : > { %v2134_v13 = vsub.s32 2, %v2117_v3  ;;  %v471_v18 = vsub.s32 7, %v2117_v3  ;;  %v2143_v19 = vsub.s32 3, %v2117_v3  ;;  %v2163_v25 = vsub.s32 0, %v2117_v3  ;;  %s1640_s27 = sshll.u32 %s366_s25, 3  ;;  %s1523_s25 = sshll.u32 %s2452_s20, 4  ;;  %s2596_s25 = int_to_ptr.vmem [resolvable:$true] %s1523_s25 }
  0x3f   : > { %v389_v10 = vrot.slane %v373_v7, %v388_v4  ;;  %v420_v12 = vrot.slane %v373_v7, %v419_v5  ;;  %v446_v14 = vrot.slane %v373_v7, %v445_v8  ;;  %404 = vperm.xlu0 %1694, %v375_v9   ;;  %v416_v28 = vrot.slane %v373_v7, %v2129_v11  ;;  %s2171_s10 = scalar_lea.vmem %s2639_s0, %s1640_s27  ;;  %s1509_s21 = scalar_lea.sflag [#allocation5], %s2104_s18 }
  0x40   : > { %1696 = vset.pattern.permute.xlu1 %v1942_v16  ;;  %v472_v20 = vrot.slane %v373_v7, %v471_v18  ;;  %v385_v26 = vrot.slane %v373_v7, %v2163_v25  ;;  %v442_v29 = vrot.slane %v373_v7, %v2134_v13  ;;  %v2176_v33 = vld [vmem:[%s2171_s10] sm:$0xff]  ;;  %v468_v37 = vrot.slane %v373_v7, %v2143_v19  ;;  %s1871_s17 = scalar_lea.vmem %s2596_s25, 128  ;;  %p2657_p12 = scmp.ne.s32.totalorder %s2652_s22, 0 }
  0x41   : > { %v430_v15 = vrot.slane %v420_v12, %v2129_v11  ;;  %v456_v17 = vrot.slane %v446_v14, %v2134_v13  ;;  %436 = vperm.xlu1 %1696, %v374_v6   ;;  %v399_v27 = vrot.slane %v389_v10, %v2163_v25  ;;  %v426_v35 = vrot.slane %v416_v28, %v2129_v11  ;;  %p1872_p11 = scmp.ne.s32.totalorder %s2596_s25, %s1871_s17  ;;  %s1945_s8 = smov [#allocation6]  }
  0x42   : > { %v482_v23 = vrot.slane %v472_v20, %v2143_v19  ;;  %v395_v30 = vrot.slane %v385_v26, %v2163_v25  ;;  %v452_v38 = vrot.slane %v442_v29, %v2134_v13  ;;  %v498_v40 = vrot.slane %v2176_v33, %v2163_v25 }
  0x43   : > { %1697 = vset.pattern.permute.xlu0 %v1943_v22  ;;  %v502_v41 = vrot.slane %v2176_v33, %v388_v4  ;;  %v478_v47 = vrot.slane %v468_v37, %v2143_v19  ;;  %v529_v50 = vrot.slane %v2176_v33, %v2129_v11  ;;  %v533_v51 = vrot.slane %v2176_v33, %v419_v5  ;;  %p1873_p13 = pnand %p1872_p11, %p2657_p12 }
  0x44   : > { %462 = vperm.xlu0 %1697, %v374_v6   ;;  %v2191_v54 = vrot.slane %v498_v40, %v2163_v25  ;;  %v555_v7 = vrot.slane %v2176_v33, %v2134_v13  ;;  %v559_v9 = vrot.slane %v2176_v33, %v445_v8  ;;  %v585_v8 = vrot.slane %v2176_v33, %v471_v18 }
  0x45   : > { %1698 = vset.pattern.permute.xlu1 %v1940_v0  ;;  %v2194_v55 = vrot.slane %v502_v41, %v2163_v25  ;;  %v2199_v2 = vrot.slane %v529_v50, %v2129_v11  ;;  %v2202_v4 = vrot.slane %v533_v51, %v2129_v11  ;;  %p1874_p7 = pneg %p1873_p13 }
  0x46   : > { %491 = vperm.xlu1 %1698, %v487_v21   ;;  %v2214_v20 = vrot.slane %v555_v7, %v2134_v13 }
  0x48   : > { %1699 = vset.pattern.permute.xlu0 %v1941_v1 }
  0x49   : > { %523 = vperm.xlu0 %1699, %v487_v21  }
  0x4a   : > { %517 = vperm.xlu1 %1698, %v488_v24  }
  0x4e   : > { %1700 = vset.pattern.permute.xlu1 %v1942_v16 }
  0x4f   : > { %549 = vperm.xlu1 %1700, %v487_v21  }
  0x53   : > { %1701 = vset.pattern.permute.xlu1 %v1943_v22 }
  0x54   : > { %575 = vperm.xlu1 %1701, %v487_v21   ;;  %v2217_v21 = vrot.slane %v559_v9, %v2134_v13  ;;  %v2230_v13 = vrot.slane %v585_v8, %v2143_v19 }
  0x58   : > { %1702 = vset.pattern.permute.xlu1 %v1940_v0 }
  0xba   : > { %v379_v31 = vpop.permute.xlu0 %378 }
  0xbb   : > { %v411_v32 = vpop.permute.xlu1 %410  ;;  %v401_v34 = vmul.f32 %v399_v27, %v379_v31  ;;  %v400_v39 = vmul.f32 %v395_v30, %v379_v31 }
  0xbc   : > { %v432_v36 = vmul.f32 %v430_v15, %v411_v32  ;;  %v431_v43 = vmul.f32 %v426_v35, %v411_v32 }
  0xbe   : > { %v405_v42 = vpop.permute.xlu0 %404 }
  0xbf   : > { %v407_v44 = vadd.f32 %v405_v42, %v400_v39  ;;  %v408_v45 = vadd.f32 %v405_v42, %v401_v34 }
  0xc0   : > { %v437_v46 = vpop.permute.xlu1 %436 }
  0xc1   : > { %v457_v48 = vmul.f32 %v452_v38, %v437_v46  ;;  %v458_v49 = vmul.f32 %v456_v17, %v437_v46  ;;  %v433_v52 = vadd.f32 %v431_v43, %v407_v44  ;;  %v434_v53 = vadd.f32 %v432_v36, %v408_v45 }
  0xc3   : > { %v459_v56 = vadd.f32 %v457_v48, %v433_v52  ;;  %v460_v57 = vadd.f32 %v458_v49, %v434_v53  ;;  %v463_v58 = vpop.permute.xlu0 %462 }
  0xc4   : > { %v483_v59 = vmul.f32 %v478_v47, %v463_v58  ;;  %v484_v60 = vmul.f32 %v482_v23, %v463_v58  ;;  %v581_v23 = vrot.slane %v2176_v33, %v2143_v19 }
  0xc5   : > { %v492_v61 = vpop.permute.xlu1 %491 }
  0xc6   : > { %v513_v62 = vmul.f32 %v2191_v54, %v492_v61  ;;  %v514_v63 = vmul.f32 %v2194_v55, %v492_v61  ;;  %v485_v5 = vadd.f32 %v483_v59, %v459_v56  ;;  %v2204_v6 = vadd.f32 %v484_v60, %v460_v57 }
  0xc7   : > { %v2227_v30 = vrot.slane %v581_v23, %v2143_v19 }
  0xc8   : > { %640 = vxpose.xlu0.b32.start.end [1/1] (short) %v485_v5, 128  ;;  %v524_v12 = vpop.permute.xlu0 %523 }
  0xc9   : > { %v518_v10 = vpop.permute.xlu1 %517  ;;  %v544_v17 = vmul.f32 %v2199_v2, %v524_v12  ;;  %v545_v11 = vmul.f32 %v2202_v4, %v524_v12 }
  0xca   : > { %v520_v14 = vadd.f32 %v518_v10, %v513_v62  ;;  %v521_v15 = vadd.f32 %v518_v10, %v514_v63 }
  0xcc   : > { %v546_v26 = vadd.f32 %v544_v17, %v520_v14  ;;  %v547_v27 = vadd.f32 %v545_v11, %v521_v15 }
  0xce   : > { %v550_v24 = vpop.permute.xlu1 %549 }
  0xcf   : > { %v570_v28 = vmul.f32 %v2214_v20, %v550_v24  ;;  %v571_v29 = vmul.f32 %v2217_v21, %v550_v24 }
  0xd1   : > { %v573_v31 = vadd.f32 %v571_v29, %v547_v27  ;;  %v572_v32 = vadd.f32 %v570_v28, %v546_v26  ;;  %v600_v29 = vld [vmem:[%s2645_s6] sm:$0xf] }
  0xd3   : > { %v576_v34 = vpop.permute.xlu1 %575 }
  0xd4   : > { %v596_v3 = vmul.f32 %v2227_v30, %v576_v34  ;;  %v597_v18 = vmul.f32 %v2230_v13, %v576_v34 }
  0xd6   : > { %v599_v35 = vadd.f32 %v597_v18, %v573_v31  ;;  %v598_v36 = vadd.f32 %v596_v3, %v572_v32  ;;  %v601_v18 = vld [vmem:[%s2646_s7] sm:$0xf] }
  0xd8   : > { %v2234_v37 = vpack.c.bf16 %v599_v35, %v599_v35  ;;  %v720_v38 = vpack.c.bf16 %v598_v36, %v598_v36 }
  0xda   : > { %1616 = vmatprep.subr.msk.bf16.mxu0 %vm750_vm0, %v2234_v37  ;;  %v2239_v39 = vsel %vm750_vm0, %v720_v38, 0 }
  0xdb   : > { %758 = vmatpush1.bf16.msra.mxu0 %v2239_v39 }
  0xf1   : > { %1706 = vset.pattern.permute.xlu0 %v1943_v22 }
 0x148   : > { %v656_v19 = vpop.trf.xlu0 }
 0x14c   : > { %v657_v40 = vpop.trf.xlu0 }
 0x14d   : > { %v704_v41 = vpack.c.bf16 %v657_v40, %v656_v19 }
 0x14f   : > { %1617 = vmatmul.mubr.msk.bf16.vlgmr.msra.gmra.mrb[0].mxu0 %vm725_vm1, %v704_v41 }
 0x150   : > { %v658_v42 = vpop.trf.xlu0  ;;  %799 = vmatprep.mubr.bf16.mxu0 %v1940_v0 }
 0x154   : > { %v659_v43 = vpop.trf.xlu0 }
 0x155   : > { %v705_v44 = vpack.c.bf16 %v659_v43, %v658_v42 }
 0x157   : > { %1618 = vmatmul.mubr.msk.bf16.gmra.mrb[4].mxu0 %vm725_vm1, %v705_v44 }
 0x158   : > { %v660_v45 = vpop.trf.xlu0  ;;  %809 = vmatprep.mubr.bf16.mxu0 %v1940_v0 }
 0x15c   : > { %v661_v46 = vpop.trf.xlu0 }
 0x15d   : > { %v706_v47 = vpack.c.bf16 %v661_v46, %v660_v45 }
 0x15f   : > { %1619 = vmatmul.mubr.msk.bf16.gmra.mrb[8].mxu0 %vm725_vm1, %v706_v47 }
 0x160   : > { %v662_v48 = vpop.trf.xlu0  ;;  %819 = vmatprep.mubr.bf16.mxu0 %v1940_v0 }
 0x164   : > { %v663_v49 = vpop.trf.xlu0 }
 0x165   : > { %v707_v50 = vpack.c.bf16 %v663_v49, %v662_v48 }
 0x167   : > { %1620 = vmatmul.mubr.msk.bf16.gmra.mrb[12].mxu0 %vm725_vm1, %v707_v50 }
 0x168   : > { %v664_v51 = vpop.trf.xlu0  ;;  %829 = vmatprep.mubr.bf16.mxu0 %v1940_v0 }
 0x16c   : > { %v665_v52 = vpop.trf.xlu0 }
 0x16d   : > { %v708_v53 = vpack.c.bf16 %v665_v52, %v664_v51 }
 0x16f   : > { %1621 = vmatmul.mubr.msk.bf16.gmra.mrb[16].mxu0 %vm725_vm1, %v708_v53 }
 0x170   : > { %v666_v56 = vpop.trf.xlu0  ;;  %839 = vmatprep.mubr.bf16.mxu0 %v1940_v0 }
 0x174   : > { %v667_v57 = vpop.trf.xlu0 }
 0x175   : > { %v709_v58 = vpack.c.bf16 %v667_v57, %v666_v56 }
 0x177   : > { %1622 = vmatmul.mubr.msk.bf16.gmra.mrb[20].mxu0 %vm725_vm1, %v709_v58 }
 0x178   : > { %v668_v59 = vpop.trf.xlu0  ;;  %849 = vmatprep.mubr.bf16.mxu0 %v1940_v0 }
 0x17c   : > { %v669_v60 = vpop.trf.xlu0 }
 0x17d   : > { %v710_v61 = vpack.c.bf16 %v669_v60, %v668_v59 }
 0x17f   : > { %1623 = vmatmul.mubr.msk.bf16.gmra.mrb[24].mxu0 %vm725_vm1, %v710_v61 }
 0x180   : > { %v670_v62 = vpop.trf.xlu0  ;;  %859 = vmatprep.mubr.bf16.mxu0 %v1940_v0 }
 0x184   : > { %v671_v63 = vpop.trf.xlu0 }
 0x185   : > { %v711_v5 = vpack.c.bf16 %v671_v63, %v670_v62 }
 0x187   : > { %1624 = vmatmul.mubr.msk.bf16.gmra.mrb[28].mxu0 %vm725_vm1, %v711_v5 }
 0x222   : > { %v2258_v7 = vpop.f32.mrb[0].mxu0 }
 0x223   : > { %v2260_v9 = vpop.f32.mrb[1].mxu0 }
 0x224   : > { %v2262_v10 = vpop.f32.mrb[2].mxu0  ;;  %v870_v12 = vmax.f32 %v2258_v7, %v2260_v9 }
 0x225   : > { %v2266_v14 = vpop.f32.mrb[3].mxu0 }
 0x226   : > { %871 = vmax.xlane.f32.xlu1 %v870_v12  ;;  %v873_v15 = vmax.f32 %v2262_v10, %v2266_v14 }
 0x228   : > { %874 = vmax.xlane.f32.xlu0 %v873_v15 }
 0x22a   : > { %v2270_v17 = vpop.f32.mrb[4].mxu0 }
 0x22b   : > { %v2272_v11 = vpop.f32.mrb[5].mxu0 }
 0x22c   : > { %v2274_v23 = vpop.f32.mrb[6].mxu0  ;;  %v876_v8 = vmax.f32 %v2270_v17, %v2272_v11 }
 0x22d   : > { %v2278_v24 = vpop.f32.mrb[7].mxu0 }
 0x22e   : > { %v879_v26 = vmax.f32 %v2274_v23, %v2278_v24 }
 0x232   : > { %v2282_v27 = vpop.f32.mrb[8].mxu0 }
 0x233   : > { %v2284_v28 = vpop.f32.mrb[9].mxu0 }
 0x234   : > { %v2289_v31 = vpop.f32.mrb[10].mxu0  ;;  %v882_v32 = vmax.f32 %v2282_v27, %v2284_v28 }
 0x235   : > { %v2293_v34 = vpop.f32.mrb[11].mxu0 }
 0x236   : > { %v885_v3 = vmax.f32 %v2289_v31, %v2293_v34 }
 0x237   : > { %604 = vperm.xlu1 %1702, %v600_v29  }
 0x23a   : > { %v2300_v35 = vpop.f32.mrb[12].mxu0 }
 0x23b   : > { %611 = vperm.xlu1 %1702, %v601_v18   ;;  %v2302_v36 = vpop.f32.mrb[13].mxu0 }
 0x23c   : > { %v2304_v38 = vpop.f32.mrb[14].mxu0  ;;  %v888_v19 = vmax.f32 %v2300_v35, %v2302_v36 }
 0x23d   : > { %v2308_v40 = vpop.f32.mrb[15].mxu0 }
 0x23e   : > { %v891_v41 = vmax.f32 %v2304_v38, %v2308_v40 }
 0x23f   : > { %1703 = vset.pattern.permute.xlu1 %v1941_v1 }
 0x240   : > { %617 = vperm.xlu1 %1703, %v600_v29  }
 0x242   : > { %v2313_v42 = vpop.f32.mrb[16].mxu0 }
 0x243   : > { %v2315_v43 = vpop.f32.mrb[17].mxu0 }
 0x244   : > { %1704 = vset.pattern.permute.xlu1 %v1942_v16  ;;  %v2318_v44 = vpop.f32.mrb[18].mxu0  ;;  %v894_v45 = vmax.f32 %v2313_v42, %v2315_v43 }
 0x245   : > { %625 = vperm.xlu1 %1704, %v600_v29   ;;  %v2322_v46 = vpop.f32.mrb[19].mxu0 }
 0x246   : > { %v897_v47 = vmax.f32 %v2318_v44, %v2322_v46 }
 0x249   : > { %1705 = vset.pattern.permute.xlu1 %v1943_v22 }
 0x24a   : > { %v2327_v1 = vpop.f32.mrb[20].mxu0 }
 0x24b   : > { %v2329_v48 = vpop.f32.mrb[21].mxu0 }
 0x24c   : > { %v2331_v49 = vpop.f32.mrb[22].mxu0  ;;  %v900_v16 = vmax.f32 %v2327_v1, %v2329_v48 }
 0x24d   : > { %v2335_v50 = vpop.f32.mrb[23].mxu0 }
 0x24e   : > { %v903_v51 = vmax.f32 %v2331_v49, %v2335_v50 }
 0x252   : > { %v2339_v52 = vpop.f32.mrb[24].mxu0 }
 0x253   : > { %v2341_v53 = vpop.f32.mrb[25].mxu0 }
 0x254   : > { %v2343_v56 = vpop.f32.mrb[26].mxu0  ;;  %v906_v22 = vmax.f32 %v2339_v52, %v2341_v53 }
 0x255   : > { %v2347_v57 = vpop.f32.mrb[27].mxu0 }
 0x256   : > { %v909_v58 = vmax.f32 %v2343_v56, %v2347_v57 }
 0x25a   : > { %v2351_v59 = vpop.f32.mrb[28].mxu0 }
 0x25b   : > { %v2353_v60 = vpop.f32.mrb[29].mxu0 }
 0x25c   : > { %v2355_v61 = vpop.f32.mrb[30].mxu0  ;;  %v912_v62 = vmax.f32 %v2351_v59, %v2353_v60 }
 0x25d   : > { %v2359_v63 = vpop.f32.mrb[31].mxu0 }
 0x25e   : > { %v915_v5 = vmax.f32 %v2355_v61, %v2359_v63 }
 0x269   : > { %877 = vmax.xlane.f32.xlu1 %v876_v8 }
 0x26d   : > { %880 = vmax.xlane.f32.xlu1 %v879_v26 }
 0x271   : > { %883 = vmax.xlane.f32.xlu1 %v882_v32 }
 0x275   : > { %886 = vmax.xlane.f32.xlu1 %v885_v3 }
 0x279   : > { %889 = vmax.xlane.f32.xlu1 %v888_v19 }
 0x27d   : > { %892 = vmax.xlane.f32.xlu1 %v891_v41 }
 0x281   : > { %895 = vmax.xlane.f32.xlu1 %v894_v45 }
 0x285   : > { %898 = vmax.xlane.f32.xlu1 %v897_v47 }
 0x289   : > { %901 = vmax.xlane.f32.xlu1 %v900_v16 }
 0x28d   : > { %904 = vmax.xlane.f32.xlu1 %v903_v51 }
 0x291   : > { %907 = vmax.xlane.f32.xlu1 %v906_v22 }
 0x295   : > { %910 = vmax.xlane.f32.xlu1 %v909_v58 }
 0x299   : > { %913 = vmax.xlane.f32.xlu1 %v912_v62 }
 0x29d   : > { %916 = vmax.xlane.f32.xlu1 %v915_v5 }
 0x2ae   : > { %633 = vperm.xlu1 %1705, %v600_v29  }
 0x2b3   : > { %v872_v12 = vpop.xlane.xlu1 %871 }
 0x2b4   : > { %v918_v15 = vsub.f32 %v2258_v7, %v872_v12  ;;  %v919_v18 = vsub.f32 %v2260_v9, %v872_v12 }
 0x2b5   : > { %v875_v8 = vpop.xlane.xlu0 %874 }
 0x2b6   : > { %v950_v26 = vmul.f32 1.442695, %v918_v15  ;;  %v952_v32 = vmul.f32 1.442695, %v919_v18  ;;  %v920_v3 = vsub.f32 %v2262_v10, %v875_v8  ;;  %v921_v19 = vsub.f32 %v2266_v14, %v875_v8 }
 0x2b7   : > { %v605_v41 = vpop.permute.xlu1 %604  ;;  %v1944_v14 = vmov 1065369472  }
 0x2b8   : > { %1708 = vpow2.f32 %v950_v26  ;;  %v954_v45 = vmul.f32 1.442695, %v920_v3  ;;  %v956_v47 = vmul.f32 1.442695, %v921_v19  ;;  %v607_v29 = vmul.f32 %v605_v41, %v2191_v54  ;;  %1102 = vmatprep.mubr.bf16.mxu0 %v1944_v14 }
 0x2b9   : > { %1710 = vpow2.f32 %v952_v32  ;;  %v608_v16 = vmul.f32 %v605_v41, %v2194_v55 }
 0x2ba   : > { %1712 = vpow2.f32 %v954_v45 }
 0x2bb   : > { %1714 = vpow2.f32 %v956_v47  ;;  %v612_v7 = vpop.permute.xlu1 %611 }
 0x2bc   : > { %v614_v9 = vadd.f32 %v612_v7, %v607_v29  ;;  %v2369_v51 = vadd.f32 %v612_v7, %v608_v16 }
 0x2bf   : > { %v2371_v22 = vpop.permute.xlu1 %617 }
 0x2c0   : > { %v620_v10 = vmul.f32 %v2371_v22, %v2199_v2 }
 0x2c2   : > { %v1709_v58 = vpop.eup %1708  ;;  %v622_v62 = vadd.f32 %v620_v10, %v614_v9 }
 0x2c3   : > { %v1711_v5 = vpop.eup %1710 }
 0x2c4   : > { %v1713_v12 = vpop.eup %1712  ;;  %v2376_v54 = vpop.permute.xlu1 %625 }
 0x2c5   : > { %v1715_v55 = vpop.eup %1714  ;;  %v628_v15 = vmul.f32 %v2376_v54, %v2214_v20  ;;  %v1014_v18 = vpack.c.bf16 %v1713_v12, %v1709_v58 }
 0x2c6   : > { %v1015_v8 = vpack.c.bf16 %v1715_v55, %v1711_v5 }
 0x2c7   : > { %v2380_v26 = vadd.f32 %v628_v15, %v622_v62 }
 0x2c8   : > { %1030 = vmatprep.subr.bf16.mxu1 %v1015_v8  ;;  %1070 = vmatprep.subr.bf16.mxu0 %v1015_v8 }
 0x2c9   : > { %1031 = vmatpush1.bf16.xpose.msra.mxu1 %v1014_v18  ;;  %1071 = vmatpush1.bf16.xpose.msra.mxu0 %v1014_v18 }
 0x2d7   : > { %672 = vxpose.xlu1.b32.start.end [1/1] (short) %v2204_v6, 128 }
 0x2f6   : > { %v878_v2 = vpop.xlane.xlu1 %877 }
 0x2f7   : > { %v922_v32 = vsub.f32 %v2270_v17, %v878_v2  ;;  %v923_v3 = vsub.f32 %v2272_v11, %v878_v2 }
 0x2f9   : > { %v958_v19 = vmul.f32 1.442695, %v922_v32  ;;  %v960_v41 = vmul.f32 1.442695, %v923_v3 }
 0x2fa   : > { %v881_v45 = vpop.xlane.xlu1 %880 }
 0x2fb   : > { %v924_v20 = vsub.f32 %v2274_v23, %v881_v45  ;;  %v925_v47 = vsub.f32 %v2278_v24, %v881_v45  ;;  %1716 = vpow2.f32 %v958_v19 }
 0x2fc   : > { %1718 = vpow2.f32 %v960_v41 }
 0x2fd   : > { %v962_v29 = vmul.f32 1.442695, %v924_v20  ;;  %v964_v16 = vmul.f32 1.442695, %v925_v47 }
 0x2fe   : > { %v884_v7 = vpop.xlane.xlu1 %883 }
 0x2ff   : > { %1720 = vpow2.f32 %v962_v29  ;;  %v926_v6 = vsub.f32 %v2282_v27, %v884_v7  ;;  %v927_v9 = vsub.f32 %v2284_v28, %v884_v7 }
 0x300   : > { %1722 = vpow2.f32 %v964_v16 }
 0x301   : > { %v966_v17 = vmul.f32 1.442695, %v926_v6  ;;  %v968_v11 = vmul.f32 1.442695, %v927_v9 }
 0x302   : > { %v887_v10 = vpop.xlane.xlu1 %886 }
 0x303   : > { %v928_v58 = vsub.f32 %v2289_v31, %v887_v10  ;;  %v929_v23 = vsub.f32 %v2293_v34, %v887_v10  ;;  %1724 = vpow2.f32 %v966_v17 }
 0x304   : > { %1726 = vpow2.f32 %v968_v11 }
 0x305   : > { %v970_v24 = vmul.f32 1.442695, %v928_v58  ;;  %v972_v62 = vmul.f32 1.442695, %v929_v23  ;;  %v1717_v12 = vpop.eup %1716 }
 0x306   : > { %v890_v5 = vpop.xlane.xlu1 %889  ;;  %v1719_v28 = vpop.eup %1718 }
 0x307   : > { %1728 = vpow2.f32 %v970_v24  ;;  %v930_v55 = vsub.f32 %v2300_v35, %v890_v5  ;;  %v931_v27 = vsub.f32 %v2302_v36, %v890_v5 }
 0x308   : > { %1730 = vpow2.f32 %v972_v62 }
 0x309   : > { %v1721_v15 = vpop.eup %1720  ;;  %v974_v18 = vmul.f32 1.442695, %v930_v55  ;;  %v976_v2 = vmul.f32 1.442695, %v931_v27 }
 0x30a   : > { %v1723_v8 = vpop.eup %1722  ;;  %v893_v31 = vpop.xlane.xlu1 %892  ;;  %v1016_v32 = vpack.c.bf16 %v1721_v15, %v1717_v12 }
 0x30b   : > { %v932_v34 = vsub.f32 %v2304_v38, %v893_v31  ;;  %v933_v3 = vsub.f32 %v2308_v40, %v893_v31  ;;  %v1017_v19 = vpack.c.bf16 %v1723_v8, %v1719_v28  ;;  %1732 = vpow2.f32 %v974_v18 }
 0x30c   : > { %1734 = vpow2.f32 %v976_v2 }
 0x30d   : > { %v978_v41 = vmul.f32 1.442695, %v932_v34  ;;  %v980_v45 = vmul.f32 1.442695, %v933_v3  ;;  %1032 = vmatprep.subr.bf16.mxu1 %v1017_v19  ;;  %1072 = vmatprep.subr.bf16.mxu0 %v1017_v19  ;;  %v1725_v36 = vpop.eup %1724 }
 0x30e   : > { %1033 = vmatpush1.bf16.xpose.msra.mxu1 %v1016_v32  ;;  %1073 = vmatpush1.bf16.xpose.msra.mxu0 %v1016_v32  ;;  %v896_v35 = vpop.xlane.xlu1 %895  ;;  %v1727_v29 = vpop.eup %1726 }
 0x30f   : > { %1736 = vpow2.f32 %v978_v41  ;;  %v934_v20 = vsub.f32 %v2313_v42, %v896_v35  ;;  %v935_v47 = vsub.f32 %v2315_v43, %v896_v35 }
 0x310   : > { %1738 = vpow2.f32 %v980_v45 }
 0x311   : > { %v1729_v38 = vpop.eup %1728  ;;  %v982_v40 = vmul.f32 1.442695, %v934_v20  ;;  %v984_v7 = vmul.f32 1.442695, %v935_v47 }
 0x312   : > { %v1731_v16 = vpop.eup %1730  ;;  %v899_v6 = vpop.xlane.xlu1 %898  ;;  %v1018_v9 = vpack.c.bf16 %v1729_v38, %v1725_v36 }
 0x313   : > { %v936_v17 = vsub.f32 %v2318_v44, %v899_v6  ;;  %v937_v11 = vsub.f32 %v2322_v46, %v899_v6  ;;  %v1019_v10 = vpack.c.bf16 %v1731_v16, %v1727_v29  ;;  %1740 = vpow2.f32 %v982_v40 }
 0x314   : > { %1742 = vpow2.f32 %v984_v7 }
 0x315   : > { %v986_v58 = vmul.f32 1.442695, %v936_v17  ;;  %v988_v23 = vmul.f32 1.442695, %v937_v11  ;;  %1034 = vmatprep.subr.bf16.mxu1 %v1019_v10  ;;  %1074 = vmatprep.subr.bf16.mxu0 %v1019_v10  ;;  %v1733_v43 = vpop.eup %1732 }
 0x316   : > { %1035 = vmatpush1.bf16.xpose.msra.mxu1 %v1018_v9  ;;  %1075 = vmatpush1.bf16.xpose.msra.mxu0 %v1018_v9  ;;  %v902_v42 = vpop.xlane.xlu1 %901  ;;  %v1735_v5 = vpop.eup %1734 }
 0x317   : > { %1744 = vpow2.f32 %v986_v58  ;;  %v938_v24 = vsub.f32 %v2327_v1, %v902_v42  ;;  %v939_v62 = vsub.f32 %v2329_v48, %v902_v42  ;;  %v629_v58 = vmul.f32 %v2376_v54, %v2217_v21 }
 0x318   : > { %1746 = vpow2.f32 %v988_v23 }
 0x319   : > { %v1737_v44 = vpop.eup %1736  ;;  %v990_v46 = vmul.f32 1.442695, %v938_v24  ;;  %v992_v55 = vmul.f32 1.442695, %v939_v62 }
 0x31a   : > { %v1739_v12 = vpop.eup %1738  ;;  %v905_v27 = vpop.xlane.xlu1 %904  ;;  %v1020_v28 = vpack.c.bf16 %v1737_v44, %v1733_v43 }
 0x31b   : > { %v940_v15 = vsub.f32 %v2331_v49, %v905_v27  ;;  %v941_v18 = vsub.f32 %v2335_v50, %v905_v27  ;;  %v1021_v8 = vpack.c.bf16 %v1739_v12, %v1735_v5  ;;  %1748 = vpow2.f32 %v990_v46 }
 0x31c   : > { %1750 = vpow2.f32 %v992_v55 }
 0x31d   : > { %v994_v2 = vmul.f32 1.442695, %v940_v15  ;;  %v996_v31 = vmul.f32 1.442695, %v941_v18  ;;  %1036 = vmatprep.subr.bf16.mxu1 %v1021_v8  ;;  %1076 = vmatprep.subr.bf16.mxu0 %v1021_v8  ;;  %v1741_v48 = vpop.eup %1740 }
 0x31e   : > { %1037 = vmatpush1.bf16.xpose.msra.mxu1 %v1020_v28  ;;  %1077 = vmatpush1.bf16.xpose.msra.mxu0 %v1020_v28  ;;  %v908_v1 = vpop.xlane.xlu1 %907  ;;  %v1743_v3 = vpop.eup %1742 }
 0x31f   : > { %1752 = vpow2.f32 %v994_v2  ;;  %v942_v32 = vsub.f32 %v2339_v52, %v908_v1  ;;  %v943_v34 = vsub.f32 %v2341_v53, %v908_v1 }
 0x320   : > { %1754 = vpow2.f32 %v996_v31 }
 0x321   : > { %v1745_v49 = vpop.eup %1744  ;;  %v998_v50 = vmul.f32 1.442695, %v942_v32  ;;  %v1000_v41 = vmul.f32 1.442695, %v943_v34 }
 0x322   : > { %v1747_v19 = vpop.eup %1746  ;;  %v911_v45 = vpop.xlane.xlu1 %910  ;;  %v1022_v35 = vpack.c.bf16 %v1745_v49, %v1741_v48 }
 0x323   : > { %v944_v36 = vsub.f32 %v2343_v56, %v911_v45  ;;  %v945_v20 = vsub.f32 %v2347_v57, %v911_v45  ;;  %v1023_v47 = vpack.c.bf16 %v1747_v19, %v1743_v3  ;;  %1756 = vpow2.f32 %v998_v50 }
 0x324   : > { %1758 = vpow2.f32 %v1000_v41  ;;  %v621_v57 = vmul.f32 %v2371_v22, %v2202_v4 }
 0x325   : > { %v1002_v29 = vmul.f32 1.442695, %v944_v36  ;;  %v1004_v38 = vmul.f32 1.442695, %v945_v20  ;;  %1038 = vmatprep.subr.bf16.mxu1 %v1023_v47  ;;  %1078 = vmatprep.subr.bf16.mxu0 %v1023_v47  ;;  %v1749_v53 = vpop.eup %1748 }
 0x326   : > { %1039 = vmatpush1.bf16.xpose.msra.mxu1 %v1022_v35  ;;  %1079 = vmatpush1.bf16.xpose.msra.mxu0 %v1022_v35  ;;  %v914_v52 = vpop.xlane.xlu1 %913  ;;  %v1751_v7 = vpop.eup %1750 }
 0x327   : > { %1760 = vpow2.f32 %v1002_v29  ;;  %v946_v40 = vsub.f32 %v2351_v59, %v914_v52  ;;  %v947_v16 = vsub.f32 %v2353_v60, %v914_v52  ;;  %v623_v60 = vadd.f32 %v621_v57, %v2369_v51 }
 0x328   : > { %1762 = vpow2.f32 %v1004_v38 }
 0x329   : > { %v1753_v56 = vpop.eup %1752  ;;  %v1006_v6 = vmul.f32 1.442695, %v946_v40  ;;  %v1008_v17 = vmul.f32 1.442695, %v947_v16  ;;  %v631_v62 = vadd.f32 %v629_v58, %v623_v60  ;;  %v1116_v58 = vstv %s2443_s30 }
 0x32a   : > { %v1755_v9 = vpop.eup %1754  ;;  %v917_v11 = vpop.xlane.xlu1 %916  ;;  %v1024_v10 = vpack.c.bf16 %v1753_v56, %v1749_v53 }
 0x32b   : > { %v948_v23 = vsub.f32 %v2355_v61, %v917_v11  ;;  %v949_v59 = vsub.f32 %v2359_v63, %v917_v11  ;;  %v1025_v42 = vpack.c.bf16 %v1755_v9, %v1751_v7  ;;  %1764 = vpow2.f32 %v1006_v6 }
 0x32c   : > { %1766 = vpow2.f32 %v1008_v17 }
 0x32d   : > { %v1010_v43 = vmul.f32 1.442695, %v948_v23  ;;  %v1012_v24 = vmul.f32 1.442695, %v949_v59  ;;  %1040 = vmatprep.subr.bf16.mxu1 %v1025_v42  ;;  %1080 = vmatprep.subr.bf16.mxu0 %v1025_v42  ;;  %v1757_v22 = vpop.eup %1756 }
 0x32e   : > { %1041 = vmatpush1.bf16.xpose.msra.mxu1 %v1024_v10  ;;  %1081 = vmatpush1.bf16.xpose.msra.mxu0 %v1024_v10  ;;  %v634_v4 = vpop.permute.xlu1 %633  ;;  %v1759_v61 = vpop.eup %1758 }
 0x32f   : > { %1768 = vpow2.f32 %v1010_v43  ;;  %v637_v21 = vmul.f32 %v634_v4, %v2230_v13  ;;  %v636_v13 = vmul.f32 %v634_v4, %v2227_v30 }
 0x330   : > { %1770 = vpow2.f32 %v1012_v24 }
 0x331   : > { %v1761_v63 = vpop.eup %1760  ;;  %v639_v54 = vadd.f32 %v637_v21, %v631_v62  ;;  %v638_v8 = vadd.f32 %v636_v13, %v2380_v26 }
 0x332   : > { %v1763_v5 = vpop.eup %1762  ;;  %v1026_v51 = vpack.c.bf16 %v1761_v63, %v1757_v22 }
 0x333   : > { %v1027_v44 = vpack.c.bf16 %v1763_v5, %v1759_v61  ;;  %v723_v46 = vpack.c.bf16 %v639_v54, %v639_v54  ;;  %v2421_v2 = vpack.c.bf16 %v638_v8, %v638_v8 }
 0x335   : > { %1042 = vmatprep.subr.bf16.mxu1 %v1027_v44  ;;  %1082 = vmatprep.subr.bf16.mxu0 %v1027_v44  ;;  %v1765_v12 = vpop.eup %1764 }
 0x336   : > { %1043 = vmatpush1.bf16.xpose.msra.mxu1 %v1026_v51  ;;  %1062 = vmatprep.mubr.bf16.mxu1 %v723_v46  ;;  %v1767_v55 = vpop.eup %1766 }
 0x337   : > { %1083 = vmatpush1.bf16.xpose.msra.mxu0 %v1026_v51 }
 0x339   : > { %v1769_v27 = vpop.eup %1768 }
 0x33a   : > { %v1771_v28 = vpop.eup %1770  ;;  %v1028_v15 = vpack.c.bf16 %v1769_v27, %v1765_v12 }
 0x33b   : > { %v1029_v18 = vpack.c.bf16 %v1771_v28, %v1767_v55 }
 0x33d   : > { %1044 = vmatprep.subr.bf16.mxu1 %v1029_v18  ;;  %1084 = vmatprep.subr.bf16.mxu0 %v1029_v18 }
 0x33e   : > { %1045 = vmatpush1.bf16.xpose.msra.mxu1 %v1028_v15 }
 0x33f   : > { %1085 = vmatpush1.bf16.xpose.msra.mxu0 %v1028_v15  ;;  %1625 = vmatprep.subr.msk.bf16.mxu1 %vm750_vm0, %v2234_v37 }
 0x345   : > { %1063 = vmatmul.mubr.bf16.vlgmr.msra.gmra.mrb[0].mxu1 %v2421_v2 }
 0x346   : > { %1103 = vmatmul.mubr.bf16.vlgmr.msra.gmra.mrb[32].mxu0 %v1944_v14  ;;  %1145 = vmatpush1.bf16.msra.mxu1 %v2239_v39 }
 0x347   : > { %1449 = vmatprep.mubr.bf16.mxu0 %v723_v46  ;;  %1176 = vmatprep.mubr.bf16.mxu1 %v1940_v0 }
 0x357   : > { %v688_v30 = vpop.trf.xlu1 }
 0x35b   : > { %v689_v31 = vpop.trf.xlu1 }
 0x35c   : > { %v712_v1 = vpack.c.bf16 %v689_v31, %v688_v30 }
 0x35e   : > { %1626 = vmatmul.mubr.msk.bf16.vlgmr.msra.gmra.mrb[4].mxu1 %vm725_vm1, %v712_v1 }
 0x35f   : > { %v690_v26 = vpop.trf.xlu1  ;;  %1186 = vmatprep.mubr.bf16.mxu1 %v1940_v0 }
 0x363   : > { %v691_v37 = vpop.trf.xlu1 }
 0x364   : > { %v713_v48 = vpack.c.bf16 %v691_v37, %v690_v26 }
 0x366   : > { %1627 = vmatmul.mubr.msk.bf16.gmra.mrb[8].mxu1 %vm725_vm1, %v713_v48 }
 0x367   : > { %v692_v32 = vpop.trf.xlu1  ;;  %1196 = vmatprep.mubr.bf16.mxu1 %v1940_v0 }
 0x36b   : > { %v693_v34 = vpop.trf.xlu1 }
 0x36c   : > { %v714_v39 = vpack.c.bf16 %v693_v34, %v692_v32 }
 0x36e   : > { %1628 = vmatmul.mubr.msk.bf16.gmra.mrb[12].mxu1 %vm725_vm1, %v714_v39 }
 0x36f   : > { %v694_v3 = vpop.trf.xlu1  ;;  %1206 = vmatprep.mubr.bf16.mxu1 %v1940_v0 }
 0x373   : > { %v695_v49 = vpop.trf.xlu1 }
 0x374   : > { %v715_v50 = vpack.c.bf16 %v695_v49, %v694_v3 }
 0x376   : > { %1629 = vmatmul.mubr.msk.bf16.gmra.mrb[16].mxu1 %vm725_vm1, %v715_v50 }
 0x377   : > { %v696_v19 = vpop.trf.xlu1  ;;  %1216 = vmatprep.mubr.bf16.mxu1 %v1940_v0 }
 0x37b   : > { %v697_v41 = vpop.trf.xlu1 }
 0x37c   : > { %v716_v45 = vpack.c.bf16 %v697_v41, %v696_v19 }
 0x37e   : > { %1630 = vmatmul.mubr.msk.bf16.gmra.mrb[20].mxu1 %vm725_vm1, %v716_v45 }
 0x37f   : > { %v698_v35 = vpop.trf.xlu1  ;;  %1226 = vmatprep.mubr.bf16.mxu1 %v1940_v0 }
 0x383   : > { %v699_v36 = vpop.trf.xlu1 }
 0x384   : > { %v717_v20 = vpack.c.bf16 %v699_v36, %v698_v35 }
 0x386   : > { %1631 = vmatmul.mubr.msk.bf16.gmra.mrb[24].mxu1 %vm725_vm1, %v717_v20 }
 0x387   : > { %v700_v47 = vpop.trf.xlu1  ;;  %1236 = vmatprep.mubr.bf16.mxu1 %v1940_v0 }
 0x38b   : > { %v701_v29 = vpop.trf.xlu1 }
 0x38c   : > { %v718_v38 = vpack.c.bf16 %v701_v29, %v700_v47 }
 0x38e   : > { %1632 = vmatmul.mubr.msk.bf16.gmra.mrb[28].mxu1 %vm725_vm1, %v718_v38 }
 0x38f   : > { %v702_v52 = vpop.trf.xlu1  ;;  %1246 = vmatprep.mubr.bf16.mxu1 %v1940_v0 }
 0x393   : > { %v703_v53 = vpop.trf.xlu1 }
 0x394   : > { %v719_v40 = vpack.c.bf16 %v703_v53, %v702_v52 }
 0x396   : > { %1633 = vmatmul.mubr.msk.bf16.gmra.mrb[32].mxu1 %vm725_vm1, %v719_v40 }
 0x397   : > { %1489 = vmatprep.mubr.bf16.mxu1 %v1944_v14 }
 0x418   : > { %v1064_v16 = vpop.f32.mrb[0].mxu1 }
 0x419   : > { %v1104_v7 = vpop.f32.mrb[32].mxu0  ;;  %v1066_v56 = vpop.f32.mrb[1].mxu1 }
 0x41a   : > { %1772 = vrcp.f32 %v1104_v7  ;;  %v1067_v57 = vpop.f32.mrb[2].mxu1  ;;  %v1106_v6 = vpop.f32.mrb[33].mxu0 }
 0x41b   : > { %v1068_v9 = vpop.f32.mrb[3].mxu1  ;;  %v1107_v17 = vpop.f32.mrb[34].mxu0 }
 0x41c   : > { %v1108_v11 = vpop.f32.mrb[35].mxu0 }
 0x424   : > { %v1773_v0 = vpop.eup %1772 }
 0x425   : > { %v1114_v10 = vrot.slane %v1773_v0, %v2163_v25 }
 0x427   : > { %v1115_v23 = vmul.f32 %v1114_v10, %v1064_v16 }
 0x429   : > { %v1117_v59 = vmul.f32 %v1116_v58, %v1115_v23 }
 0x42b   : > { %v1118_v42 = vadd.f32 %v1117_v59, %v2176_v33 }
 0x42d   : > { %1119 = vst [vmem:[%s2452_s20] sm:$0xf] %v1118_v42 }
 0x431   : > { %v2455_v60 = vpop.f32.mrb[4].mxu1 }
 0x432   : > { %v2457_v43 = vpop.f32.mrb[5].mxu1 }
 0x433   : > { %v2459_v24 = vpop.f32.mrb[6].mxu1  ;;  %v1257_v4 = vmax.f32 %v2455_v60, %v2457_v43 }
 0x434   : > { %v2463_v22 = vpop.f32.mrb[7].mxu1 }
 0x435   : > { %1258 = vmax.xlane.f32.xlu0 %v1257_v4  ;;  %v1260_v33 = vmax.f32 %v2459_v24, %v2463_v22 }
 0x439   : > { %1261 = vmax.xlane.f32.xlu0 %v1260_v33  ;;  %v2467_v62 = vpop.f32.mrb[8].mxu1 }
 0x43a   : > { %v2469_v21 = vpop.f32.mrb[9].mxu1 }
 0x43b   : > { %v2471_v61 = vpop.f32.mrb[10].mxu1  ;;  %v1263_v63 = vmax.f32 %v2467_v62, %v2469_v21 }
 0x43c   : > { %v2475_v54 = vpop.f32.mrb[11].mxu1 }
 0x43d   : > { %1264 = vmax.xlane.f32.xlu0 %v1263_v63  ;;  %v1266_v5 = vmax.f32 %v2471_v61, %v2475_v54 }
 0x441   : > { %1267 = vmax.xlane.f32.xlu0 %v1266_v5  ;;  %v2479_v51 = vpop.f32.mrb[12].mxu1 }
 0x442   : > { %v2481_v44 = vpop.f32.mrb[13].mxu1 }
 0x443   : > { %v2483_v46 = vpop.f32.mrb[14].mxu1  ;;  %v1269_v12 = vmax.f32 %v2479_v51, %v2481_v44 }
 0x444   : > { %v2487_v55 = vpop.f32.mrb[15].mxu1 }
 0x445   : > { %1270 = vmax.xlane.f32.xlu0 %v1269_v12  ;;  %v1272_v27 = vmax.f32 %v2483_v46, %v2487_v55 }
 0x449   : > { %1273 = vmax.xlane.f32.xlu0 %v1272_v27  ;;  %v2491_v28 = vpop.f32.mrb[16].mxu1 }
 0x44a   : > { %v2493_v15 = vpop.f32.mrb[17].mxu1 }
 0x44b   : > { %v2495_v13 = vpop.f32.mrb[18].mxu1  ;;  %v1275_v18 = vmax.f32 %v2491_v28, %v2493_v15 }
 0x44c   : > { %v2499_v8 = vpop.f32.mrb[19].mxu1 }
 0x44d   : > { %1276 = vmax.xlane.f32.xlu0 %v1275_v18  ;;  %v1278_v30 = vmax.f32 %v2495_v13, %v2499_v8 }
 0x451   : > { %1279 = vmax.xlane.f32.xlu0 %v1278_v30  ;;  %v2503_v31 = vpop.f32.mrb[20].mxu1 }
 0x452   : > { %v2505_v1 = vpop.f32.mrb[21].mxu1 }
 0x453   : > { %v2507_v26 = vpop.f32.mrb[22].mxu1  ;;  %v1281_v37 = vmax.f32 %v2503_v31, %v2505_v1 }
 0x454   : > { %v2511_v48 = vpop.f32.mrb[23].mxu1 }
 0x455   : > { %1282 = vmax.xlane.f32.xlu1 %v1281_v37  ;;  %v1284_v32 = vmax.f32 %v2507_v26, %v2511_v48 }
 0x457   : > { %1285 = vmax.xlane.f32.xlu0 %v1284_v32 }
 0x459   : > { %v2515_v34 = vpop.f32.mrb[24].mxu1 }
 0x45a   : > { %v2517_v39 = vpop.f32.mrb[25].mxu1 }
 0x45b   : > { %v2519_v3 = vpop.f32.mrb[26].mxu1  ;;  %v1287_v49 = vmax.f32 %v2515_v34, %v2517_v39 }
 0x45c   : > { %v2523_v50 = vpop.f32.mrb[27].mxu1 }
 0x45d   : > { %1288 = vmax.xlane.f32.xlu0 %v1287_v49  ;;  %v1290_v19 = vmax.f32 %v2519_v3, %v2523_v50 }
 0x461   : > { %1291 = vmax.xlane.f32.xlu0 %v1290_v19  ;;  %v2527_v41 = vpop.f32.mrb[28].mxu1 }
 0x462   : > { %v2529_v45 = vpop.f32.mrb[29].mxu1 }
 0x463   : > { %v2531_v35 = vpop.f32.mrb[30].mxu1  ;;  %v1293_v36 = vmax.f32 %v2527_v41, %v2529_v45 }
 0x464   : > { %v2535_v20 = vpop.f32.mrb[31].mxu1 }
 0x465   : > { %1294 = vmax.xlane.f32.xlu0 %v1293_v36  ;;  %v1296_v47 = vmax.f32 %v2531_v35, %v2535_v20 }
 0x469   : > { %1297 = vmax.xlane.f32.xlu0 %v1296_v47  ;;  %v2539_v29 = vpop.f32.mrb[32].mxu1 }
 0x46a   : > { %v2541_v38 = vpop.f32.mrb[33].mxu1 }
 0x46b   : > { %v2543_v52 = vpop.f32.mrb[34].mxu1  ;;  %v1299_v53 = vmax.f32 %v2539_v29, %v2541_v38 }
 0x46c   : > { %v2547_v40 = vpop.f32.mrb[35].mxu1 }
 0x46d   : > { %1300 = vmax.xlane.f32.xlu0 %v1299_v53  ;;  %v1302_v16 = vmax.f32 %v2543_v52, %v2547_v40 }
 0x471   : > { %1303 = vmax.xlane.f32.xlu0 %v1302_v16 }
 0x4c2   : > { %v1259_v7 = vpop.xlane.xlu0 %1258 }
 0x4c3   : > { %v1305_v56 = vsub.f32 %v2455_v60, %v1259_v7  ;;  %v1306_v57 = vsub.f32 %v2457_v43, %v1259_v7 }
 0x4c5   : > { %v1337_v6 = vmul.f32 1.442695, %v1305_v56  ;;  %v1339_v9 = vmul.f32 1.442695, %v1306_v57 }
 0x4c6   : > { %v1262_v17 = vpop.xlane.xlu0 %1261 }
 0x4c7   : > { %v1307_v11 = vsub.f32 %v2459_v24, %v1262_v17  ;;  %v1308_v0 = vsub.f32 %v2463_v22, %v1262_v17  ;;  %1774 = vpow2.f32 %v1337_v6 }
 0x4c8   : > { %1776 = vpow2.f32 %v1339_v9 }
 0x4c9   : > { %v1341_v10 = vmul.f32 1.442695, %v1307_v11  ;;  %v1343_v23 = vmul.f32 1.442695, %v1308_v0 }
 0x4ca   : > { %v1265_v59 = vpop.xlane.xlu0 %1264 }
 0x4cb   : > { %1778 = vpow2.f32 %v1341_v10  ;;  %v1309_v42 = vsub.f32 %v2467_v62, %v1265_v59  ;;  %v1310_v4 = vsub.f32 %v2469_v21, %v1265_v59 }
 0x4cc   : > { %1780 = vpow2.f32 %v1343_v23 }
 0x4cd   : > { %v1345_v60 = vmul.f32 1.442695, %v1309_v42  ;;  %v1347_v43 = vmul.f32 1.442695, %v1310_v4 }
 0x4ce   : > { %v1268_v33 = vpop.xlane.xlu0 %1267 }
 0x4cf   : > { %v1311_v63 = vsub.f32 %v2471_v61, %v1268_v33  ;;  %v1312_v24 = vsub.f32 %v2475_v54, %v1268_v33  ;;  %1782 = vpow2.f32 %v1345_v60 }
 0x4d0   : > { %1784 = vpow2.f32 %v1347_v43 }
 0x4d1   : > { %v1349_v22 = vmul.f32 1.442695, %v1311_v63  ;;  %v1351_v5 = vmul.f32 1.442695, %v1312_v24  ;;  %v1775_v27 = vpop.eup %1774 }
 0x4d2   : > { %v1271_v12 = vpop.xlane.xlu0 %1270  ;;  %v1777_v21 = vpop.eup %1776 }
 0x4d3   : > { %1786 = vpow2.f32 %v1349_v22  ;;  %v1313_v18 = vsub.f32 %v2479_v51, %v1271_v12  ;;  %v1314_v62 = vsub.f32 %v2481_v44, %v1271_v12 }
 0x4d4   : > { %1788 = vpow2.f32 %v1351_v5 }
 0x4d5   : > { %v1779_v30 = vpop.eup %1778  ;;  %v1353_v37 = vmul.f32 1.442695, %v1313_v18  ;;  %v1355_v49 = vmul.f32 1.442695, %v1314_v62 }
 0x4d6   : > { %v1781_v32 = vpop.eup %1780  ;;  %v1274_v61 = vpop.xlane.xlu0 %1273  ;;  %v1401_v19 = vpack.c.bf16 %v1779_v30, %v1775_v27 }
 0x4d7   : > { %v1315_v54 = vsub.f32 %v2483_v46, %v1274_v61  ;;  %v1316_v36 = vsub.f32 %v2487_v55, %v1274_v61  ;;  %v1402_v47 = vpack.c.bf16 %v1781_v32, %v1777_v21  ;;  %1790 = vpow2.f32 %v1353_v37 }
 0x4d8   : > { %1792 = vpow2.f32 %v1355_v49 }
 0x4d9   : > { %v1357_v53 = vmul.f32 1.442695, %v1315_v54  ;;  %v1359_v16 = vmul.f32 1.442695, %v1316_v36  ;;  %1417 = vmatprep.subr.bf16.mxu0 %v1402_v47  ;;  %1457 = vmatprep.subr.bf16.mxu1 %v1402_v47  ;;  %v1783_v44 = vpop.eup %1782 }
 0x4da   : > { %1418 = vmatpush1.bf16.xpose.msra.mxu0 %v1401_v19  ;;  %1458 = vmatpush1.bf16.xpose.msra.mxu1 %v1401_v19  ;;  %v1277_v51 = vpop.xlane.xlu0 %1276  ;;  %v1785_v57 = vpop.eup %1784 }
 0x4db   : > { %1794 = vpow2.f32 %v1357_v53  ;;  %v1317_v7 = vsub.f32 %v2491_v28, %v1277_v51  ;;  %v1318_v56 = vsub.f32 %v2493_v15, %v1277_v51 }
 0x4dc   : > { %1796 = vpow2.f32 %v1359_v16 }
 0x4dd   : > { %v1787_v46 = vpop.eup %1786  ;;  %v1361_v55 = vmul.f32 1.442695, %v1317_v7  ;;  %v1363_v9 = vmul.f32 1.442695, %v1318_v56 }
 0x4de   : > { %v1789_v6 = vpop.eup %1788  ;;  %v1280_v17 = vpop.xlane.xlu0 %1279  ;;  %v1403_v11 = vpack.c.bf16 %v1787_v46, %v1783_v44 }
 0x4df   : > { %v1319_v0 = vsub.f32 %v2495_v13, %v1280_v17  ;;  %v1320_v10 = vsub.f32 %v2499_v8, %v1280_v17  ;;  %v1404_v23 = vpack.c.bf16 %v1789_v6, %v1785_v57  ;;  %1798 = vpow2.f32 %v1361_v55 }
 0x4e0   : > { %1800 = vpow2.f32 %v1363_v9 }
 0x4e1   : > { %v1365_v59 = vmul.f32 1.442695, %v1319_v0  ;;  %v1367_v42 = vmul.f32 1.442695, %v1320_v10  ;;  %1419 = vmatprep.subr.bf16.mxu0 %v1404_v23  ;;  %1459 = vmatprep.subr.bf16.mxu1 %v1404_v23  ;;  %v1791_v15 = vpop.eup %1790 }
 0x4e2   : > { %1420 = vmatpush1.bf16.xpose.msra.mxu0 %v1403_v11  ;;  %1460 = vmatpush1.bf16.xpose.msra.mxu1 %v1403_v11  ;;  %v1283_v28 = vpop.xlane.xlu1 %1282  ;;  %v1793_v43 = vpop.eup %1792 }
 0x4e3   : > { %1802 = vpow2.f32 %v1365_v59  ;;  %v1321_v4 = vsub.f32 %v2503_v31, %v1283_v28  ;;  %v1322_v60 = vsub.f32 %v2505_v1, %v1283_v28 }
 0x4e4   : > { %1804 = vpow2.f32 %v1367_v42  ;;  %v1286_v13 = vpop.xlane.xlu0 %1285 }
 0x4e5   : > { %v1795_v8 = vpop.eup %1794  ;;  %v1369_v33 = vmul.f32 1.442695, %v1321_v4  ;;  %v1371_v63 = vmul.f32 1.442695, %v1322_v60  ;;  %v1323_v24 = vsub.f32 %v2507_v26, %v1286_v13  ;;  %v1324_v22 = vsub.f32 %v2511_v48, %v1286_v13 }
 0x4e6   : > { %v1797_v5 = vpop.eup %1796  ;;  %v1405_v12 = vpack.c.bf16 %v1795_v8, %v1791_v15 }
 0x4e7   : > { %1806 = vpow2.f32 %v1369_v33  ;;  %v1373_v27 = vmul.f32 1.442695, %v1323_v24  ;;  %v1375_v18 = vmul.f32 1.442695, %v1324_v22  ;;  %v1406_v62 = vpack.c.bf16 %v1797_v5, %v1793_v43 }
 0x4e8   : > { %1808 = vpow2.f32 %v1371_v63 }
 0x4e9   : > { %1810 = vpow2.f32 %v1373_v27  ;;  %1421 = vmatprep.subr.bf16.mxu0 %v1406_v62  ;;  %1461 = vmatprep.subr.bf16.mxu1 %v1406_v62  ;;  %v1799_v1 = vpop.eup %1798 }
 0x4ea   : > { %1812 = vpow2.f32 %v1375_v18  ;;  %1422 = vmatpush1.bf16.xpose.msra.mxu0 %v1405_v12  ;;  %1462 = vmatpush1.bf16.xpose.msra.mxu1 %v1405_v12  ;;  %v1289_v31 = vpop.xlane.xlu0 %1288  ;;  %v1801_v48 = vpop.eup %1800 }
 0x4eb   : > { %v1325_v21 = vsub.f32 %v2515_v34, %v1289_v31  ;;  %v1326_v26 = vsub.f32 %v2517_v39, %v1289_v31 }
 0x4ed   : > { %v1803_v30 = vpop.eup %1802  ;;  %v1377_v37 = vmul.f32 1.442695, %v1325_v21  ;;  %v1379_v49 = vmul.f32 1.442695, %v1326_v26 }
 0x4ee   : > { %v1805_v32 = vpop.eup %1804  ;;  %v1292_v61 = vpop.xlane.xlu0 %1291  ;;  %v1407_v19 = vpack.c.bf16 %v1803_v30, %v1799_v1 }
 0x4ef   : > { %v1327_v54 = vsub.f32 %v2519_v3, %v1292_v61  ;;  %v1328_v36 = vsub.f32 %v2523_v50, %v1292_v61  ;;  %v1408_v47 = vpack.c.bf16 %v1805_v32, %v1801_v48  ;;  %1814 = vpow2.f32 %v1377_v37 }
 0x4f0   : > { %1816 = vpow2.f32 %v1379_v49 }
 0x4f1   : > { %v1807_v53 = vpop.eup %1806  ;;  %v1381_v16 = vmul.f32 1.442695, %v1327_v54  ;;  %v1383_v51 = vmul.f32 1.442695, %v1328_v36  ;;  %1423 = vmatprep.subr.bf16.mxu0 %v1408_v47  ;;  %1463 = vmatprep.subr.bf16.mxu1 %v1408_v47 }
 0x4f2   : > { %v1809_v34 = vpop.eup %1808  ;;  %1424 = vmatpush1.bf16.xpose.msra.mxu0 %v1407_v19  ;;  %1464 = vmatpush1.bf16.xpose.msra.mxu1 %v1407_v19  ;;  %v1295_v39 = vpop.xlane.xlu0 %1294  ;;  %v1840_v19 = vld [vmem:[%s2171_s10] sm:$0xff]  ;;  %s1875_s10 = sshll.u32 %s1945_s8, 4  ;;  %s1876_s10 = int_to_ptr.vmem [resolvable:$false] %s1875_s10 }
 0x4f3   : > { %v1811_v44 = vpop.eup %1810  ;;  %1818 = vpow2.f32 %v1381_v16  ;;  %v1329_v7 = vsub.f32 %v2527_v41, %v1295_v39  ;;  %v1330_v3 = vsub.f32 %v2529_v45, %v1295_v39  ;;  %s1877_s28 = scalar_lea.vmem %s1876_s10, 256  ;;  %p1878_p10 = scmp.lt.s32.totalorder %s2596_s25, %s1876_s10 }
 0x4f4   : > { %v1813_v56 = vpop.eup %1812  ;;  %1820 = vpow2.f32 %v1383_v51  ;;  %v1409_v50 = vpack.c.bf16 %v1811_v44, %v1807_v53  ;;  %p1879_p2 = scmp.lt.s32.totalorder %s1877_s28, %s1871_s17 }
 0x4f5   : > { %v1385_v57 = vmul.f32 1.442695, %v1329_v7  ;;  %v1410_v46 = vpack.c.bf16 %v1813_v56, %v1809_v34  ;;  %v1387_v55 = vmul.f32 1.442695, %v1330_v3 }
 0x4f6   : > { %v1298_v6 = vpop.xlane.xlu0 %1297  ;;  %p1880_p4 = por %p1879_p2, %p1878_p10 }
 0x4f7   : > { %v1331_v9 = vsub.f32 %v2531_v35, %v1298_v6  ;;  %v1332_v17 = vsub.f32 %v2535_v20, %v1298_v6  ;;  %1425 = vmatprep.subr.bf16.mxu0 %v1410_v46  ;;  %1465 = vmatprep.subr.bf16.mxu1 %v1410_v46  ;;  %1822 = vpow2.f32 %v1385_v57 }
 0x4f8   : > { %1824 = vpow2.f32 %v1387_v55  ;;  %p1881_p5 = pnand %p1880_p4, %p1874_p7 }
 0x4f9   : > { %v1389_v11 = vmul.f32 1.442695, %v1331_v9  ;;  %v1391_v0 = vmul.f32 1.442695, %v1332_v17  ;;  %v1815_v45 = vpop.eup %1814 }
 0x4fa   : > { %1426 = vmatpush1.bf16.xpose.msra.mxu0 %v1409_v50  ;;  %1466 = vmatpush1.bf16.xpose.msra.mxu1 %v1409_v50  ;;  %v1301_v41 = vpop.xlane.xlu0 %1300  ;;  %v1817_v59 = vpop.eup %1816 }
 0x4fb   : > { %1826 = vpow2.f32 %v1389_v11  ;;  %v1333_v10 = vsub.f32 %v2539_v29, %v1301_v41  ;;  %v1334_v23 = vsub.f32 %v2541_v38, %v1301_v41 }
 0x4fc   : > { %1828 = vpow2.f32 %v1391_v0 }
 0x4fd   : > { %v1819_v35 = vpop.eup %1818  ;;  %v1393_v42 = vmul.f32 1.442695, %v1333_v10  ;;  %v1395_v28 = vmul.f32 1.442695, %v1334_v23 }
 0x4fe   : > { %v1821_v20 = vpop.eup %1820  ;;  %v1304_v15 = vpop.xlane.xlu0 %1303  ;;  %v1411_v4 = vpack.c.bf16 %v1819_v35, %v1815_v45 }
 0x4ff   : > { %v1335_v60 = vsub.f32 %v2543_v52, %v1304_v15  ;;  %v1336_v43 = vsub.f32 %v2547_v40, %v1304_v15  ;;  %v1412_v13 = vpack.c.bf16 %v1821_v20, %v1817_v59  ;;  %1830 = vpow2.f32 %v1393_v42 }
 0x500   : > { %1832 = vpow2.f32 %v1395_v28 }
 0x501   : > { %v1397_v8 = vmul.f32 1.442695, %v1335_v60  ;;  %v1399_v33 = vmul.f32 1.442695, %v1336_v43  ;;  %1427 = vmatprep.subr.bf16.mxu0 %v1412_v13  ;;  %1467 = vmatprep.subr.bf16.mxu1 %v1412_v13  ;;  %v1823_v29 = vpop.eup %1822 }
 0x502   : > { %1428 = vmatpush1.bf16.xpose.msra.mxu0 %v1411_v4  ;;  %1468 = vmatpush1.bf16.xpose.msra.mxu1 %v1411_v4  ;;  %v1825_v38 = vpop.eup %1824 }
 0x503   : > { %1834 = vpow2.f32 %v1397_v8 }
 0x504   : > { %1836 = vpow2.f32 %v1399_v33 }
 0x505   : > { %v1827_v63 = vpop.eup %1826 }
 0x506   : > { %v1829_v24 = vpop.eup %1828  ;;  %v1413_v22 = vpack.c.bf16 %v1827_v63, %v1823_v29 }
 0x507   : > { %v1414_v5 = vpack.c.bf16 %v1829_v24, %v1825_v38 }
 0x509   : > { %1429 = vmatprep.subr.bf16.mxu0 %v1414_v5  ;;  %1469 = vmatprep.subr.bf16.mxu1 %v1414_v5  ;;  %v1831_v52 = vpop.eup %1830 }
 0x50a   : > { %1430 = vmatpush1.bf16.xpose.msra.mxu0 %v1413_v22  ;;  %1470 = vmatpush1.bf16.xpose.msra.mxu1 %v1413_v22  ;;  %v1833_v40 = vpop.eup %1832 }
 0x50d   : > { %v1835_v12 = vpop.eup %1834 }
 0x50e   : > { %v1837_v27 = vpop.eup %1836  ;;  %v1415_v18 = vpack.c.bf16 %v1835_v12, %v1831_v52 }
 0x50f   : > { %v1416_v62 = vpack.c.bf16 %v1837_v27, %v1833_v40 }
 0x511   : > { %1431 = vmatprep.subr.bf16.mxu0 %v1416_v62  ;;  %1471 = vmatprep.subr.bf16.mxu1 %v1416_v62 }
 0x512   : > { %1432 = vmatpush1.bf16.xpose.msra.mxu0 %v1415_v18  ;;  %1472 = vmatpush1.bf16.xpose.msra.mxu1 %v1415_v18 }
 0x519   : > { %1450 = vmatmul.mubr.bf16.vlgmr.msra.gmra.mrb[36].mxu0 %v2421_v2  ;;  %1490 = vmatmul.mubr.bf16.vlgmr.msra.gmra.mrb[36].mxu1 %v1944_v14  ;;  %v1504_v14 = vcombine.high %v1840_v19, %v1840_v19 }
 0x5ec   : > { %v1451_v31 = vpop.f32.mrb[36].mxu0  ;;  %v1491_v1 = vpop.f32.mrb[36].mxu1 }
 0x5ed   : > { %1838 = vrcp.f32 %v1491_v1  ;;  %v1453_v21 = vpop.f32.mrb[37].mxu0  ;;  %v1493_v26 = vpop.f32.mrb[37].mxu1 }
 0x5ee   : > { %v1454_v48 = vpop.f32.mrb[38].mxu0  ;;  %v1494_v30 = vpop.f32.mrb[38].mxu1 }
 0x5ef   : > { %v1455_v37 = vpop.f32.mrb[39].mxu0  ;;  %v1495_v32 = vpop.f32.mrb[39].mxu1 }
 0x5f7   : > { %v1839_v49 = vpop.eup %1838 }
 0x5f8   : > { %v1501_v2 = vrot.slane %v1839_v49, %v2163_v25 }
 0x5fa   : > { %v1502_v61 = vmul.f32 %v1501_v2, %v1451_v31 }
 0x5fc   : > { %v1503_v54 = vmul.f32 %v1502_v61, %v1116_v58 }
 0x5fe   : > { %v1506_v36 = vadd.f32 %v1504_v14, %v1503_v54 }
 0x600   : > { %1507 = vst [vmem:[%s2452_s20 + $0x4] sm:$0xf] %v1506_v36 }
 0x601   : > { %1884 = shalt.err (!%p1881_p5)
}
 0x602   : > { %s1885_s18 = scalar_lea.hbm %s2594_s29, 128  ;;  %s1889_s20 = scalar_lea.hbm %s2648_s9, 256 }
 0x603   : > { %p1886_p8 = scmp.ne.s32.totalorder %s2594_s29, %s1885_s18  ;;  %p1890_p1 = scmp.lt.u32.totalorder %s2594_s29, %s2648_s9 }
 0x604   : > { %p1891_p3 = scmp.lt.u32.totalorder %s1889_s20, %s1885_s18  ;;  %p1893_p11 = scmp.lt.u32.totalorder %s1885_s18, %s2594_s29 }
 0x605   : > { %p1887_p9 = pnand %p1886_p8, %p2657_p12 }
 0x606   : > { %p1892_p6 = por %p1891_p3, %p1890_p1 }
 0x607   : > { %p1888_p0 = pneg %p1887_p9 }
 0x608   : > { %p1894_p13 = por %p1893_p11, %p1892_p6 }
 0x60a   : > { %p1895_p7 = pnand %p1894_p13, %p1888_p0 }
 0x60c   : > { %1898 = shalt.err (!%p1895_p7)
}
 0x60d   : > { %1644 = dma.vmem_to_hbm [thread:$0]  (%p2657_p12), %s2596_s25, 128, %s2594_s29, %s1509_s21  }
 0x60e PF: > { %s1535_s15 = sand.u32 1, %s1925_s11   ;;  %p2658_p10 = scmp.ne.s32.totalorder %s2653_s23, 0 }
 0x60f   : > { %p2659_p2 = scmp.ge.s32.totalorder %s1937_s14, 2  ;;  %s1536_s17 = scalar_lea.sflag [#allocation5], %s1535_s15 }
 0x611   : > { %p1651_p4 = pnand %p2659_p2, %p2658_p10 }
 0x613   : > { %1920 = dma.done.wait (!%p1651_p4), %s1536_s17, 128  }
 0x614   : > { %1922 = vsyncadd (!%p1651_p4), %s1536_s17, 4294967168  ;;  %p23_p5 = scmp.ge.s32.totalorder %s2024_s16, 4   ;;  %s2660_s11 = smov %s1929_s12 }
 0x615   : > { %s2661_s12 = smov %s1933_s13  ;;  %s2662_s13 = smov %s2036_s19 }
 0x616   : > { %s2663_s14 = smov %s2024_s16  ;;  %25 = sbr.rel (!%p23_p5) target bundleno = 7 (0x7), region = 104 }
 0x61d   :  { %1541 = vsyncpa [#allocation4], 1 }
 0x61e   :  { %1543 = vsyncpa [#allocation4 + $0x1], 1 }
 0x61f   :  { %1544 = vsyncpa [#allocation5], 1 }
 0x620   :  { %1546 = vsyncpa [#allocation5 + $0x1], 1 }

</bundles_post_ra>
